<compile_context>
chip_gen: v7x
topology: tpu7x:2x2x1
jax: 0.10.0
libtpu: 0.0.40
codegen_flags: <defaults>
</compile_context>

<pallas_src>
from functools import partial

import jax
import jax.numpy as jnp
from jax.experimental import pallas as pl
from jax.experimental.pallas import tpu as pltpu


def temporal_attention_kernel(x_ref, wq_ref, bq_ref, wk_ref, bk_ref,
                              wv_ref, bv_ref, wp_ref, bp_ref, o_ref,
                              *, n_heads, scale, approx_recip):
    tb, f, d = x_ref.shape
    hd = d // n_heads
    m = tb * f
    mxu_dtype = x_ref.dtype      # bf16 in the fast path, fp32 in the exact path

    # (TB, F, D) -> (TB*F, D): feed the MXU with TB*F rows per projection pass.
    # Free sublane merge when F is a multiple of 8.
    x = x_ref[...].reshape(m, d)

    # QKV projections: full (M, D) x (D, D) MXU matmuls, fp32 accumulation,
    # fp32 bias add.
    q = jnp.dot(x, wq_ref[...], preferred_element_type=jnp.float32) + bq_ref[...]
    k = jnp.dot(x, wk_ref[...], preferred_element_type=jnp.float32) + bk_ref[...]
    v = jnp.dot(x, wv_ref[...], preferred_element_type=jnp.float32) + bv_ref[...]

    # Fold 1/sqrt(head_dim) into q once (M*D work instead of per-head F*F),
    # then cast q/k/v to the MXU dtype ONCE so the fp32 live ranges end before
    # the attention code (frees ~3*m*D*4 bytes of vreg/VMEM pressure).
    q = (q * scale).astype(mxu_dtype)
    k = k.astype(mxu_dtype)
    v = v.astype(mxu_dtype)

    # Per-head attention, batched over the TB batch rows of this tile with a
    # single-batch-dim 3-D einsum pair per head (scores never mix batch rows).
    # Head windows are static column slices (lane-aligned when hd % 128 == 0).
    head_outs = []
    for h in range(n_heads):
        lo = h * hd
        q_h = q[:, lo:lo + hd].reshape(tb, f, hd)
        k_h = k[:, lo:lo + hd].reshape(tb, f, hd)
        v_h = v[:, lo:lo + hd].reshape(tb, f, hd)

        s = jnp.einsum('bqd,bkd->bqk', q_h, k_h,
                       preferred_element_type=jnp.float32)        # (tb, f, f)
        s = s - jnp.max(s, axis=-1, keepdims=True)                 # stable softmax
        p = jnp.exp(s)
        inv = pl.reciprocal(jnp.sum(p, axis=-1, keepdims=True), approx=approx_recip)
        p = (p * inv).astype(mxu_dtype)

        o_h = jnp.einsum('bqk,bkd->bqd', p, v_h,
                         preferred_element_type=jnp.float32)       # (tb, f, hd)
        head_outs.append(o_h.reshape(m, hd).astype(mxu_dtype))

    # Assemble all heads along the lane axis (no VMEM scratch round trip, no
    # masked per-head column stores) and run the output projection as one
    # (M, D) x (D, D) MXU matmul.
    attn_out = head_outs[0] if n_heads == 1 else jnp.concatenate(head_outs, axis=1)
    y = jnp.dot(attn_out, wp_ref[...],
                preferred_element_type=jnp.float32) + bp_ref[...]

    # Single full-width lane-dense store.
    o_ref[...] = y.reshape(tb, f, d).astype(o_ref.dtype)


def _tpu_generation_config():
    """Return (target_mxu_rows, vmem_limit_bytes, tensorcores_per_chip)."""
    kind = ""
    try:
        kind = jax.devices()[0].device_kind.lower()
    except Exception:
        pass
    vmem_cap = None
    try:
        vmem_cap = int(pltpu.get_tpu_info().vmem_capacity_bytes)
    except Exception:
        vmem_cap = None

    if "v7" in kind:            # 64 MiB VMEM/TC, 2 TCs/chip, 2x256 MXU
        rows, vmem_default, cores = 256, 48 << 20, 2
    elif "v6" in kind:          # 128 MiB VMEM, 1 TC, 2x256 MXU -> bigger tiles
        rows, vmem_default, cores = 512, 96 << 20, 1
    elif "v5" in kind:          # 128 MiB VMEM, 1 TC, 4x128 MXU -> 128 rows enough
        rows, vmem_default, cores = 128, 64 << 20, 1
    else:
        rows, vmem_default, cores = 256, 64 << 20, 1

    vmem_limit = vmem_default
    if vmem_cap is not None:
        vmem_limit = max(32 << 20, min(int(0.75 * vmem_cap), 100 << 20))
    return rows, vmem_limit, cores


def _pick_block_b(B, F_, target_rows, num_cores):
    """Smallest divisor of B whose tile reaches the MXU row target; on
    multi-TC chips prefer a step count divisible by the core count."""
    divisors = [t for t in range(1, B + 1) if B % t == 0]
    cands = [t for t in divisors if t * F_ >= target_rows] or [B]
    block_b = cands[0]
    if num_cores > 1:
        even = [t for t in cands if (B // t) % num_cores == 0]
        if even:
            block_b = even[0]
        else:
            even_any = [t for t in divisors if (B // t) % num_cores == 0]
            if even_any:
                block_b = even_any[-1]   # largest tile giving a shardable grid
    return block_b


def temporal_attention(x, params, n_heads, *, block_b=None,
                       compute_dtype=jnp.bfloat16):
    """x: (B, F, D); params = (wq, bq, wk, bk, wv, bv, wp, bp) with weights
    (D, D) in (in, out) layout and biases (1, D).

    Efficiency envelope: D % 128 == 0, head_dim % 128 == 0 and F % 8 == 0 keep
    all in-kernel slices/stores lane/sublane aligned; other shapes are correct
    but incur relayouts. Dropout is identity (eval semantics)."""
    B, F_, D = x.shape
    hd = D // n_heads
    assert hd * n_heads == D, "d_model must be divisible by n_heads"
    scale = 1.0 / (hd ** 0.5)
    compute_dtype = jnp.dtype(compute_dtype)
    out_dtype = x.dtype

    target_rows, vmem_limit, num_cores = _tpu_generation_config()
    if block_b is None:
        block_b = _pick_block_b(B, F_, target_rows, num_cores)
    tb = block_b
    assert B % tb == 0

    wq, bq, wk, bk, wv, bv, wp, bp = params
    # Cast MXU operands once outside the kernel (halves weight DMA/VMEM in the
    # bf16 path); biases stay fp32 and are added to the fp32 accumulators.
    x_c = x.astype(compute_dtype)
    wq, wk, wv, wp = (w.astype(compute_dtype) for w in (wq, wk, wv, wp))
    bq, bk, bv, bp = (b.astype(jnp.float32) for b in (bq, bk, bv, bp))

    kernel = partial(temporal_attention_kernel, n_heads=n_heads, scale=scale,
                     approx_recip=(compute_dtype == jnp.dtype(jnp.bfloat16)))

    nbytes = lambda a: a.size * a.dtype.itemsize
    cost = pl.CostEstimate(
        flops=8 * B * F_ * D * D + 4 * B * F_ * F_ * D,
        transcendentals=B * n_heads * F_ * F_,
        bytes_accessed=(nbytes(x_c)
                        + B * F_ * D * jnp.dtype(out_dtype).itemsize
                        + 4 * (nbytes(wq) + nbytes(bq))),
    )

    def build(single_buffer_weights):
        def const_spec(shape):
            kwargs = {}
            if single_buffer_weights:
                # Grid-invariant operand (index_map constant): single-buffer it,
                # default double-buffering only wastes VMEM.
                kwargs["pipeline_mode"] = pl.Buffered(1)
            return pl.BlockSpec(shape, lambda i: (0,) * len(shape), **kwargs)

        in_specs = [pl.BlockSpec((tb, F_, D), lambda i: (i, 0, 0)),
                    const_spec((D, D)), const_spec((1, D)),
                    const_spec((D, D)), const_spec((1, D)),
                    const_spec((D, D)), const_spec((1, D)),
                    const_spec((D, D)), const_spec((1, D))]

        return pl.pallas_call(
            kernel,
            out_shape=jax.ShapeDtypeStruct((B, F_, D), out_dtype),
            grid=(B // tb,),
            in_specs=in_specs,
            out_specs=pl.BlockSpec((tb, F_, D), lambda i: (i, 0, 0)),
            compiler_params=pltpu.CompilerParams(
                dimension_semantics=("parallel",),
                vmem_limit_bytes=vmem_limit),
            cost_estimate=cost,
        )

    args = (x_c, wq, bq, wk, bk, wv, bv, wp, bp)
    try:
        return build(True)(*args)
    except Exception:
        # Fallback for JAX builds that reject pipeline_mode / Buffered(1):
        # identical kernel, default double-buffered weights.
        return build(False)(*args)


def init_params(key, d_model):
    """Deterministic synthetic parameter init (approximates nn.Linear init)."""
    ks = jax.random.split(key, 8)
    bound = 1.0 / (d_model ** 0.5)

    def lin(kw, kb):
        w = jax.random.uniform(kw, (d_model, d_model), jnp.float32, -bound, bound)
        b = jax.random.uniform(kb, (1, d_model), jnp.float32, -bound, bound)
        return w, b

    wq, bq = lin(ks[0], ks[1])
    wk, bk = lin(ks[2], ks[3])
    wv, bv = lin(ks[4], ks[5])
    wp, bp = lin(ks[6], ks[7])
    return (wq, bq, wk, bk, wv, bv, wp, bp)


def reference_attention(x, params, n_heads):
    """Pure-JAX reference mirroring the PyTorch forward (dropout = identity)."""
    wq, bq, wk, bk, wv, bv, wp, bp = params
    B, F_, D = x.shape
    hd = D // n_heads
    scale = 1.0 / (hd ** 0.5)

    def split_heads(t):  # (B, F, D) -> (B, H, F, hd)
        return t.reshape(B, F_, n_heads, hd).transpose(0, 2, 1, 3)

    q = split_heads(x @ wq + bq)
    k = split_heads(x @ wk + bk)
    v = split_heads(x @ wv + bv)
    attn = jax.nn.softmax((q @ jnp.swapaxes(k, -2, -1)) * scale, axis=-1)
    out = (attn @ v).transpose(0, 2, 1, 3).reshape(B, F_, D)
    return out @ wp + bp


if __name__ == "__main__":
    B, F_, D = 2, 8, 32
    n_heads = 4

    key = jax.random.PRNGKey(0)
    kx, kp = jax.random.split(key)
    x = jax.random.normal(kx, (B, F_, D), dtype=jnp.float32)
    params = init_params(kp, D)

    ref = reference_attention(x, params, n_heads)

    # Exact-dtype path (fp32 MXU inputs): tight correctness check.
    out_f32 = jax.block_until_ready(
        temporal_attention(x, params, n_heads, compute_dtype=jnp.float32))
    assert out_f32.shape == (B, F_, D)
    assert jnp.allclose(out_f32, ref, atol=1e-4, rtol=1e-4), "fp32 path mismatch"

    # Performance path (bf16 MXU inputs, fp32 accumulation): loose check.
    out_bf16 = jax.block_until_ready(
        temporal_attention(x, params, n_heads, compute_dtype=jnp.bfloat16))
    assert out_bf16.shape == (B, F_, D)
    assert jnp.allclose(out_bf16, ref, atol=5e-2, rtol=5e-2), "bf16 path mismatch"

    print("KERNEL_OK")
</pallas_src>

<mosaic_0001>
module attributes {stable_mosaic.version = 11 : i64} {
  func.func @temporal_attention_kernel(%arg0: i32, %arg1: memref<2x8x32xf32, #tpu.memory_space<vmem>>, %arg2: memref<32x32xf32, #tpu.memory_space<vmem>>, %arg3: memref<1x32xf32, #tpu.memory_space<vmem>>, %arg4: memref<32x32xf32, #tpu.memory_space<vmem>>, %arg5: memref<1x32xf32, #tpu.memory_space<vmem>>, %arg6: memref<32x32xf32, #tpu.memory_space<vmem>>, %arg7: memref<1x32xf32, #tpu.memory_space<vmem>>, %arg8: memref<32x32xf32, #tpu.memory_space<vmem>>, %arg9: memref<1x32xf32, #tpu.memory_space<vmem>>, %arg10: memref<2x8x32xf32, #tpu.memory_space<vmem>>) attributes {dimension_semantics = [#tpu.dimension_semantics<parallel>], iteration_bounds = array<i64: 1>, scalar_prefetch = 0 : i64, scratch_operands = 0 : i64, tpu.core_type = #tpu.core_type<tc>, window_params = [{transform_indices = @transform_0, window_bounds = array<i64: 2, 8, 32>}, {pipeline_mode = #tpu.pipeline_mode<synchronous>, transform_indices = @transform_1, window_bounds = array<i64: 32, 32>}, {pipeline_mode = #tpu.pipeline_mode<synchronous>, transform_indices = @transform_2, window_bounds = array<i64: 1, 32>}, {pipeline_mode = #tpu.pipeline_mode<synchronous>, transform_indices = @transform_3, window_bounds = array<i64: 32, 32>}, {pipeline_mode = #tpu.pipeline_mode<synchronous>, transform_indices = @transform_4, window_bounds = array<i64: 1, 32>}, {pipeline_mode = #tpu.pipeline_mode<synchronous>, transform_indices = @transform_5, window_bounds = array<i64: 32, 32>}, {pipeline_mode = #tpu.pipeline_mode<synchronous>, transform_indices = @transform_6, window_bounds = array<i64: 1, 32>}, {pipeline_mode = #tpu.pipeline_mode<synchronous>, transform_indices = @transform_7, window_bounds = array<i64: 32, 32>}, {pipeline_mode = #tpu.pipeline_mode<synchronous>, transform_indices = @transform_8, window_bounds = array<i64: 1, 32>}, {transform_indices = @transform_9, window_bounds = array<i64: 2, 8, 32>}]} {
    %c0 = arith.constant 0 : index
    %c0_0 = arith.constant 0 : index
    %c0_1 = arith.constant 0 : index
    %0 = vector.load %arg1[%c0, %c0_0, %c0_1] : memref<2x8x32xf32, #tpu.memory_space<vmem>>, vector<2x8x32xf32>
    %1 = vector.shape_cast %0 : vector<2x8x32xf32> to vector<16x32xf32>
    %c0_2 = arith.constant 0 : index
    %c0_3 = arith.constant 0 : index
    %2 = vector.load %arg2[%c0_2, %c0_3] : memref<32x32xf32, #tpu.memory_space<vmem>>, vector<32x32xf32>
    %cst = arith.constant dense<0.000000e+00> : vector<16x32xf32>
    %3 = tpu.matmul %1, %2, %cst {dimension_numbers = #tpu.dot_dimension_numbers<[1], [0], [0], [1], [0, 0, 1, 1], [], []>} : vector<16x32xf32>, vector<32x32xf32>, vector<16x32xf32> -> vector<16x32xf32>
    %c0_4 = arith.constant 0 : index
    %c0_5 = arith.constant 0 : index
    %4 = vector.load %arg3[%c0_4, %c0_5] : memref<1x32xf32, #tpu.memory_space<vmem>>, vector<1x32xf32>
    %5 = vector.broadcast %4 : vector<1x32xf32> to vector<16x32xf32>
    %6 = arith.addf %3, %5 : vector<16x32xf32>
    %c0_6 = arith.constant 0 : index
    %c0_7 = arith.constant 0 : index
    %7 = vector.load %arg4[%c0_6, %c0_7] : memref<32x32xf32, #tpu.memory_space<vmem>>, vector<32x32xf32>
    %cst_8 = arith.constant dense<0.000000e+00> : vector<16x32xf32>
    %8 = tpu.matmul %1, %7, %cst_8 {dimension_numbers = #tpu.dot_dimension_numbers<[1], [0], [0], [1], [0, 0, 1, 1], [], []>} : vector<16x32xf32>, vector<32x32xf32>, vector<16x32xf32> -> vector<16x32xf32>
    %c0_9 = arith.constant 0 : index
    %c0_10 = arith.constant 0 : index
    %9 = vector.load %arg5[%c0_9, %c0_10] : memref<1x32xf32, #tpu.memory_space<vmem>>, vector<1x32xf32>
    %10 = vector.broadcast %9 : vector<1x32xf32> to vector<16x32xf32>
    %11 = arith.addf %8, %10 : vector<16x32xf32>
    %c0_11 = arith.constant 0 : index
    %c0_12 = arith.constant 0 : index
    %12 = vector.load %arg6[%c0_11, %c0_12] : memref<32x32xf32, #tpu.memory_space<vmem>>, vector<32x32xf32>
    %cst_13 = arith.constant dense<0.000000e+00> : vector<16x32xf32>
    %13 = tpu.matmul %1, %12, %cst_13 {dimension_numbers = #tpu.dot_dimension_numbers<[1], [0], [0], [1], [0, 0, 1, 1], [], []>} : vector<16x32xf32>, vector<32x32xf32>, vector<16x32xf32> -> vector<16x32xf32>
    %c0_14 = arith.constant 0 : index
    %c0_15 = arith.constant 0 : index
    %14 = vector.load %arg7[%c0_14, %c0_15] : memref<1x32xf32, #tpu.memory_space<vmem>>, vector<1x32xf32>
    %15 = vector.broadcast %14 : vector<1x32xf32> to vector<16x32xf32>
    %16 = arith.addf %13, %15 : vector<16x32xf32>
    %cst_16 = arith.constant 0.353553385 : f32
    %17 = vector.broadcast %cst_16 : f32 to vector<16x32xf32>
    %18 = arith.mulf %6, %17 : vector<16x32xf32>
    %19 = vector.extract_strided_slice %18 {offsets = [0, 0], sizes = [16, 8], strides = [1, 1]} : vector<16x32xf32> to vector<16x8xf32>
    %20 = vector.shape_cast %19 : vector<16x8xf32> to vector<2x8x8xf32>
    %21 = vector.extract_strided_slice %11 {offsets = [0, 0], sizes = [16, 8], strides = [1, 1]} : vector<16x32xf32> to vector<16x8xf32>
    %22 = vector.shape_cast %21 : vector<16x8xf32> to vector<2x8x8xf32>
    %23 = vector.extract_strided_slice %16 {offsets = [0, 0], sizes = [16, 8], strides = [1, 1]} : vector<16x32xf32> to vector<16x8xf32>
    %24 = vector.shape_cast %23 : vector<16x8xf32> to vector<2x8x8xf32>
    "tpu.trace_start"() <{level = 10 : i32, message = "bqd,bkd->bqk"}> : () -> ()
    %cst_17 = arith.constant dense<0.000000e+00> : vector<2x8x8xf32>
    %25 = tpu.matmul %20, %22, %cst_17 {dimension_numbers = #tpu.dot_dimension_numbers<[2], [2], [1], [1], [0, 0, 0, 1, 1, 1], [0], [0]>} : vector<2x8x8xf32>, vector<2x8x8xf32>, vector<2x8x8xf32> -> vector<2x8x8xf32>
    "tpu.trace_stop"() : () -> ()
    %cst_18 = arith.constant dense<0xFF800000> : vector<2x8xf32>
    %26 = vector.multi_reduction <maximumf>, %25, %cst_18 [2] : vector<2x8x8xf32> to vector<2x8xf32>
    %27 = vector.shape_cast %26 : vector<2x8xf32> to vector<2x8x1xf32>
    %28 = vector.broadcast %27 : vector<2x8x1xf32> to vector<2x8x8xf32>
    %29 = arith.subf %25, %28 : vector<2x8x8xf32>
    %30 = math.exp %29 : vector<2x8x8xf32>
    %cst_19 = arith.constant dense<0.000000e+00> : vector<2x8xf32>
    %31 = vector.multi_reduction <add>, %30, %cst_19 [2] : vector<2x8x8xf32> to vector<2x8xf32>
    %32 = vector.shape_cast %31 : vector<2x8xf32> to vector<2x8x1xf32>
    %33 = tpu.reciprocal %32 : vector<2x8x1xf32> -> vector<2x8x1xf32>
    %34 = vector.broadcast %33 : vector<2x8x1xf32> to vector<2x8x8xf32>
    %35 = arith.mulf %30, %34 : vector<2x8x8xf32>
    "tpu.trace_start"() <{level = 10 : i32, message = "bqk,bkd->bqd"}> : () -> ()
    %cst_20 = arith.constant dense<0.000000e+00> : vector<2x8x8xf32>
    %36 = tpu.matmul %35, %24, %cst_20 {dimension_numbers = #tpu.dot_dimension_numbers<[2], [1], [1], [2], [0, 0, 0, 1, 1, 2], [0], [0]>} : vector<2x8x8xf32>, vector<2x8x8xf32>, vector<2x8x8xf32> -> vector<2x8x8xf32>
    "tpu.trace_stop"() : () -> ()
    %37 = vector.shape_cast %36 : vector<2x8x8xf32> to vector<16x8xf32>
    %38 = vector.extract_strided_slice %18 {offsets = [0, 8], sizes = [16, 8], strides = [1, 1]} : vector<16x32xf32> to vector<16x8xf32>
    %39 = vector.shape_cast %38 : vector<16x8xf32> to vector<2x8x8xf32>
    %40 = vector.extract_strided_slice %11 {offsets = [0, 8], sizes = [16, 8], strides = [1, 1]} : vector<16x32xf32> to vector<16x8xf32>
    %41 = vector.shape_cast %40 : vector<16x8xf32> to vector<2x8x8xf32>
    %42 = vector.extract_strided_slice %16 {offsets = [0, 8], sizes = [16, 8], strides = [1, 1]} : vector<16x32xf32> to vector<16x8xf32>
    %43 = vector.shape_cast %42 : vector<16x8xf32> to vector<2x8x8xf32>
    "tpu.trace_start"() <{level = 10 : i32, message = "bqd,bkd->bqk"}> : () -> ()
    %cst_21 = arith.constant dense<0.000000e+00> : vector<2x8x8xf32>
    %44 = tpu.matmul %39, %41, %cst_21 {dimension_numbers = #tpu.dot_dimension_numbers<[2], [2], [1], [1], [0, 0, 0, 1, 1, 1], [0], [0]>} : vector<2x8x8xf32>, vector<2x8x8xf32>, vector<2x8x8xf32> -> vector<2x8x8xf32>
    "tpu.trace_stop"() : () -> ()
    %cst_22 = arith.constant dense<0xFF800000> : vector<2x8xf32>
    %45 = vector.multi_reduction <maximumf>, %44, %cst_22 [2] : vector<2x8x8xf32> to vector<2x8xf32>
    %46 = vector.shape_cast %45 : vector<2x8xf32> to vector<2x8x1xf32>
    %47 = vector.broadcast %46 : vector<2x8x1xf32> to vector<2x8x8xf32>
    %48 = arith.subf %44, %47 : vector<2x8x8xf32>
    %49 = math.exp %48 : vector<2x8x8xf32>
    %cst_23 = arith.constant dense<0.000000e+00> : vector<2x8xf32>
    %50 = vector.multi_reduction <add>, %49, %cst_23 [2] : vector<2x8x8xf32> to vector<2x8xf32>
    %51 = vector.shape_cast %50 : vector<2x8xf32> to vector<2x8x1xf32>
    %52 = tpu.reciprocal %51 : vector<2x8x1xf32> -> vector<2x8x1xf32>
    %53 = vector.broadcast %52 : vector<2x8x1xf32> to vector<2x8x8xf32>
    %54 = arith.mulf %49, %53 : vector<2x8x8xf32>
    "tpu.trace_start"() <{level = 10 : i32, message = "bqk,bkd->bqd"}> : () -> ()
    %cst_24 = arith.constant dense<0.000000e+00> : vector<2x8x8xf32>
    %55 = tpu.matmul %54, %43, %cst_24 {dimension_numbers = #tpu.dot_dimension_numbers<[2], [1], [1], [2], [0, 0, 0, 1, 1, 2], [0], [0]>} : vector<2x8x8xf32>, vector<2x8x8xf32>, vector<2x8x8xf32> -> vector<2x8x8xf32>
    "tpu.trace_stop"() : () -> ()
    %56 = vector.shape_cast %55 : vector<2x8x8xf32> to vector<16x8xf32>
    %57 = vector.extract_strided_slice %18 {offsets = [0, 16], sizes = [16, 8], strides = [1, 1]} : vector<16x32xf32> to vector<16x8xf32>
    %58 = vector.shape_cast %57 : vector<16x8xf32> to vector<2x8x8xf32>
    %59 = vector.extract_strided_slice %11 {offsets = [0, 16], sizes = [16, 8], strides = [1, 1]} : vector<16x32xf32> to vector<16x8xf32>
    %60 = vector.shape_cast %59 : vector<16x8xf32> to vector<2x8x8xf32>
    %61 = vector.extract_strided_slice %16 {offsets = [0, 16], sizes = [16, 8], strides = [1, 1]} : vector<16x32xf32> to vector<16x8xf32>
    %62 = vector.shape_cast %61 : vector<16x8xf32> to vector<2x8x8xf32>
    "tpu.trace_start"() <{level = 10 : i32, message = "bqd,bkd->bqk"}> : () -> ()
    %cst_25 = arith.constant dense<0.000000e+00> : vector<2x8x8xf32>
    %63 = tpu.matmul %58, %60, %cst_25 {dimension_numbers = #tpu.dot_dimension_numbers<[2], [2], [1], [1], [0, 0, 0, 1, 1, 1], [0], [0]>} : vector<2x8x8xf32>, vector<2x8x8xf32>, vector<2x8x8xf32> -> vector<2x8x8xf32>
    "tpu.trace_stop"() : () -> ()
    %cst_26 = arith.constant dense<0xFF800000> : vector<2x8xf32>
    %64 = vector.multi_reduction <maximumf>, %63, %cst_26 [2] : vector<2x8x8xf32> to vector<2x8xf32>
    %65 = vector.shape_cast %64 : vector<2x8xf32> to vector<2x8x1xf32>
    %66 = vector.broadcast %65 : vector<2x8x1xf32> to vector<2x8x8xf32>
    %67 = arith.subf %63, %66 : vector<2x8x8xf32>
    %68 = math.exp %67 : vector<2x8x8xf32>
    %cst_27 = arith.constant dense<0.000000e+00> : vector<2x8xf32>
    %69 = vector.multi_reduction <add>, %68, %cst_27 [2] : vector<2x8x8xf32> to vector<2x8xf32>
    %70 = vector.shape_cast %69 : vector<2x8xf32> to vector<2x8x1xf32>
    %71 = tpu.reciprocal %70 : vector<2x8x1xf32> -> vector<2x8x1xf32>
    %72 = vector.broadcast %71 : vector<2x8x1xf32> to vector<2x8x8xf32>
    %73 = arith.mulf %68, %72 : vector<2x8x8xf32>
    "tpu.trace_start"() <{level = 10 : i32, message = "bqk,bkd->bqd"}> : () -> ()
    %cst_28 = arith.constant dense<0.000000e+00> : vector<2x8x8xf32>
    %74 = tpu.matmul %73, %62, %cst_28 {dimension_numbers = #tpu.dot_dimension_numbers<[2], [1], [1], [2], [0, 0, 0, 1, 1, 2], [0], [0]>} : vector<2x8x8xf32>, vector<2x8x8xf32>, vector<2x8x8xf32> -> vector<2x8x8xf32>
    "tpu.trace_stop"() : () -> ()
    %75 = vector.shape_cast %74 : vector<2x8x8xf32> to vector<16x8xf32>
    %76 = vector.extract_strided_slice %18 {offsets = [0, 24], sizes = [16, 8], strides = [1, 1]} : vector<16x32xf32> to vector<16x8xf32>
    %77 = vector.shape_cast %76 : vector<16x8xf32> to vector<2x8x8xf32>
    %78 = vector.extract_strided_slice %11 {offsets = [0, 24], sizes = [16, 8], strides = [1, 1]} : vector<16x32xf32> to vector<16x8xf32>
    %79 = vector.shape_cast %78 : vector<16x8xf32> to vector<2x8x8xf32>
    %80 = vector.extract_strided_slice %16 {offsets = [0, 24], sizes = [16, 8], strides = [1, 1]} : vector<16x32xf32> to vector<16x8xf32>
    %81 = vector.shape_cast %80 : vector<16x8xf32> to vector<2x8x8xf32>
    "tpu.trace_start"() <{level = 10 : i32, message = "bqd,bkd->bqk"}> : () -> ()
    %cst_29 = arith.constant dense<0.000000e+00> : vector<2x8x8xf32>
    %82 = tpu.matmul %77, %79, %cst_29 {dimension_numbers = #tpu.dot_dimension_numbers<[2], [2], [1], [1], [0, 0, 0, 1, 1, 1], [0], [0]>} : vector<2x8x8xf32>, vector<2x8x8xf32>, vector<2x8x8xf32> -> vector<2x8x8xf32>
    "tpu.trace_stop"() : () -> ()
    %cst_30 = arith.constant dense<0xFF800000> : vector<2x8xf32>
    %83 = vector.multi_reduction <maximumf>, %82, %cst_30 [2] : vector<2x8x8xf32> to vector<2x8xf32>
    %84 = vector.shape_cast %83 : vector<2x8xf32> to vector<2x8x1xf32>
    %85 = vector.broadcast %84 : vector<2x8x1xf32> to vector<2x8x8xf32>
    %86 = arith.subf %82, %85 : vector<2x8x8xf32>
    %87 = math.exp %86 : vector<2x8x8xf32>
    %cst_31 = arith.constant dense<0.000000e+00> : vector<2x8xf32>
    %88 = vector.multi_reduction <add>, %87, %cst_31 [2] : vector<2x8x8xf32> to vector<2x8xf32>
    %89 = vector.shape_cast %88 : vector<2x8xf32> to vector<2x8x1xf32>
    %90 = tpu.reciprocal %89 : vector<2x8x1xf32> -> vector<2x8x1xf32>
    %91 = vector.broadcast %90 : vector<2x8x1xf32> to vector<2x8x8xf32>
    %92 = arith.mulf %87, %91 : vector<2x8x8xf32>
    "tpu.trace_start"() <{level = 10 : i32, message = "bqk,bkd->bqd"}> : () -> ()
    %cst_32 = arith.constant dense<0.000000e+00> : vector<2x8x8xf32>
    %93 = tpu.matmul %92, %81, %cst_32 {dimension_numbers = #tpu.dot_dimension_numbers<[2], [1], [1], [2], [0, 0, 0, 1, 1, 2], [0], [0]>} : vector<2x8x8xf32>, vector<2x8x8xf32>, vector<2x8x8xf32> -> vector<2x8x8xf32>
    "tpu.trace_stop"() : () -> ()
    %94 = vector.shape_cast %93 : vector<2x8x8xf32> to vector<16x8xf32>
    %95 = tpu.concatenate %37, %56, %75, %94 in 1 : vector<16x8xf32>, vector<16x8xf32>, vector<16x8xf32>, vector<16x8xf32> -> vector<16x32xf32>
    %c0_33 = arith.constant 0 : index
    %c0_34 = arith.constant 0 : index
    %96 = vector.load %arg8[%c0_33, %c0_34] : memref<32x32xf32, #tpu.memory_space<vmem>>, vector<32x32xf32>
    %cst_35 = arith.constant dense<0.000000e+00> : vector<16x32xf32>
    %97 = tpu.matmul %95, %96, %cst_35 {dimension_numbers = #tpu.dot_dimension_numbers<[1], [0], [0], [1], [0, 0, 1, 1], [], []>} : vector<16x32xf32>, vector<32x32xf32>, vector<16x32xf32> -> vector<16x32xf32>
    %c0_36 = arith.constant 0 : index
    %c0_37 = arith.constant 0 : index
    %98 = vector.load %arg9[%c0_36, %c0_37] : memref<1x32xf32, #tpu.memory_space<vmem>>, vector<1x32xf32>
    %99 = vector.broadcast %98 : vector<1x32xf32> to vector<16x32xf32>
    %100 = arith.addf %97, %99 : vector<16x32xf32>
    %101 = vector.shape_cast %100 : vector<16x32xf32> to vector<2x8x32xf32>
    %c0_38 = arith.constant 0 : index
    %c0_39 = arith.constant 0 : index
    %c0_40 = arith.constant 0 : index
    %102 = vector.load %arg10[%c0_38, %c0_39, %c0_40] : memref<2x8x32xf32, #tpu.memory_space<vmem>>, vector<2x8x32xf32>
    tpu.vector_store %arg10[%c0_38, %c0_39, %c0_40], %101 {strides = array<i32>} : memref<2x8x32xf32, #tpu.memory_space<vmem>>, vector<2x8x32xf32>,
    return
  }
  func.func @transform_0(%arg0: i32) -> (i32, i32, i32) {
    %c0_i32 = arith.constant 0 : i32
    %c0_i32_0 = arith.constant 0 : i32
    %c0_i32_1 = arith.constant 0 : i32
    return %arg0, %c0_i32, %c0_i32_0 : i32, i32, i32
  }
  func.func @transform_1(%arg0: i32) -> (i32, i32) {
    %c0_i32 = arith.constant 0 : i32
    %c0_i32_0 = arith.constant 0 : i32
    %c0_i32_1 = arith.constant 0 : i32
    return %c0_i32, %c0_i32_0 : i32, i32
  }
  func.func @transform_2(%arg0: i32) -> (i32, i32) {
    %c0_i32 = arith.constant 0 : i32
    %c0_i32_0 = arith.constant 0 : i32
    %c0_i32_1 = arith.constant 0 : i32
    return %c0_i32, %c0_i32_0 : i32, i32
  }
  func.func @transform_3(%arg0: i32) -> (i32, i32) {
    %c0_i32 = arith.constant 0 : i32
    %c0_i32_0 = arith.constant 0 : i32
    %c0_i32_1 = arith.constant 0 : i32
    return %c0_i32, %c0_i32_0 : i32, i32
  }
  func.func @transform_4(%arg0: i32) -> (i32, i32) {
    %c0_i32 = arith.constant 0 : i32
    %c0_i32_0 = arith.constant 0 : i32
    %c0_i32_1 = arith.constant 0 : i32
    return %c0_i32, %c0_i32_0 : i32, i32
  }
  func.func @transform_5(%arg0: i32) -> (i32, i32) {
    %c0_i32 = arith.constant 0 : i32
    %c0_i32_0 = arith.constant 0 : i32
    %c0_i32_1 = arith.constant 0 : i32
    return %c0_i32, %c0_i32_0 : i32, i32
  }
  func.func @transform_6(%arg0: i32) -> (i32, i32) {
    %c0_i32 = arith.constant 0 : i32
    %c0_i32_0 = arith.constant 0 : i32
    %c0_i32_1 = arith.constant 0 : i32
    return %c0_i32, %c0_i32_0 : i32, i32
  }
  func.func @transform_7(%arg0: i32) -> (i32, i32) {
    %c0_i32 = arith.constant 0 : i32
    %c0_i32_0 = arith.constant 0 : i32
    %c0_i32_1 = arith.constant 0 : i32
    return %c0_i32, %c0_i32_0 : i32, i32
  }
  func.func @transform_8(%arg0: i32) -> (i32, i32) {
    %c0_i32 = arith.constant 0 : i32
    %c0_i32_0 = arith.constant 0 : i32
    %c0_i32_1 = arith.constant 0 : i32
    return %c0_i32, %c0_i32_0 : i32, i32
  }
  func.func @transform_9(%arg0: i32) -> (i32, i32, i32) {
    %c0_i32 = arith.constant 0 : i32
    %c0_i32_0 = arith.constant 0 : i32
    %c0_i32_1 = arith.constant 0 : i32
    return %arg0, %c0_i32, %c0_i32_0 : i32, i32, i32
  }
}

module attributes {stable_mosaic.version = 11 : i64} {
  func.func @temporal_attention_kernel(%arg0: i32, %arg1: memref<2x8x32xf32, #tpu.memory_space<vmem>>, %arg2: memref<32x32xf32, #tpu.memory_space<vmem>>, %arg3: memref<1x32xf32, #tpu.memory_space<vmem>>, %arg4: memref<32x32xf32, #tpu.memory_space<vmem>>, %arg5: memref<1x32xf32, #tpu.memory_space<vmem>>, %arg6: memref<32x32xf32, #tpu.memory_space<vmem>>, %arg7: memref<1x32xf32, #tpu.memory_space<vmem>>, %arg8: memref<32x32xf32, #tpu.memory_space<vmem>>, %arg9: memref<1x32xf32, #tpu.memory_space<vmem>>, %arg10: memref<2x8x32xf32, #tpu.memory_space<vmem>>) attributes {dimension_semantics = [#tpu.dimension_semantics<parallel>], iteration_bounds = array<i64: 1>, scalar_prefetch = 0 : i64, scratch_operands = 0 : i64, tpu.core_type = #tpu.core_type<tc>, window_params = [{transform_indices = @transform_0, window_bounds = array<i64: 2, 8, 32>}, {pipeline_mode = #tpu.pipeline_mode<synchronous>, transform_indices = @transform_1, window_bounds = array<i64: 32, 32>}, {pipeline_mode = #tpu.pipeline_mode<synchronous>, transform_indices = @transform_2, window_bounds = array<i64: 1, 32>}, {pipeline_mode = #tpu.pipeline_mode<synchronous>, transform_indices = @transform_3, window_bounds = array<i64: 32, 32>}, {pipeline_mode = #tpu.pipeline_mode<synchronous>, transform_indices = @transform_4, window_bounds = array<i64: 1, 32>}, {pipeline_mode = #tpu.pipeline_mode<synchronous>, transform_indices = @transform_5, window_bounds = array<i64: 32, 32>}, {pipeline_mode = #tpu.pipeline_mode<synchronous>, transform_indices = @transform_6, window_bounds = array<i64: 1, 32>}, {pipeline_mode = #tpu.pipeline_mode<synchronous>, transform_indices = @transform_7, window_bounds = array<i64: 32, 32>}, {pipeline_mode = #tpu.pipeline_mode<synchronous>, transform_indices = @transform_8, window_bounds = array<i64: 1, 32>}, {transform_indices = @transform_9, window_bounds = array<i64: 2, 8, 32>}]} {
    %c0 = arith.constant 0 : index
    %c0_0 = arith.constant 0 : index
    %c0_1 = arith.constant 0 : index
    %0 = vector.load %arg1[%c0, %c0_0, %c0_1] : memref<2x8x32xf32, #tpu.memory_space<vmem>>, vector<2x8x32xf32>
    %1 = vector.shape_cast %0 : vector<2x8x32xf32> to vector<16x32xf32>
    %c0_2 = arith.constant 0 : index
    %c0_3 = arith.constant 0 : index
    %2 = vector.load %arg2[%c0_2, %c0_3] : memref<32x32xf32, #tpu.memory_space<vmem>>, vector<32x32xf32>
    %cst = arith.constant dense<0.000000e+00> : vector<16x32xf32>
    %3 = tpu.matmul %1, %2, %cst {dimension_numbers = #tpu.dot_dimension_numbers<[1], [0], [0], [1], [0, 0, 1, 1], [], []>} : vector<16x32xf32>, vector<32x32xf32>, vector<16x32xf32> -> vector<16x32xf32>
    %c0_4 = arith.constant 0 : index
    %c0_5 = arith.constant 0 : index
    %4 = vector.load %arg3[%c0_4, %c0_5] : memref<1x32xf32, #tpu.memory_space<vmem>>, vector<1x32xf32>
    %5 = vector.broadcast %4 : vector<1x32xf32> to vector<16x32xf32>
    %6 = arith.addf %3, %5 : vector<16x32xf32>
    %c0_6 = arith.constant 0 : index
    %c0_7 = arith.constant 0 : index
    %7 = vector.load %arg4[%c0_6, %c0_7] : memref<32x32xf32, #tpu.memory_space<vmem>>, vector<32x32xf32>
    %cst_8 = arith.constant dense<0.000000e+00> : vector<16x32xf32>
    %8 = tpu.matmul %1, %7, %cst_8 {dimension_numbers = #tpu.dot_dimension_numbers<[1], [0], [0], [1], [0, 0, 1, 1], [], []>} : vector<16x32xf32>, vector<32x32xf32>, vector<16x32xf32> -> vector<16x32xf32>
    %c0_9 = arith.constant 0 : index
    %c0_10 = arith.constant 0 : index
    %9 = vector.load %arg5[%c0_9, %c0_10] : memref<1x32xf32, #tpu.memory_space<vmem>>, vector<1x32xf32>
    %10 = vector.broadcast %9 : vector<1x32xf32> to vector<16x32xf32>
    %11 = arith.addf %8, %10 : vector<16x32xf32>
    %c0_11 = arith.constant 0 : index
    %c0_12 = arith.constant 0 : index
    %12 = vector.load %arg6[%c0_11, %c0_12] : memref<32x32xf32, #tpu.memory_space<vmem>>, vector<32x32xf32>
    %cst_13 = arith.constant dense<0.000000e+00> : vector<16x32xf32>
    %13 = tpu.matmul %1, %12, %cst_13 {dimension_numbers = #tpu.dot_dimension_numbers<[1], [0], [0], [1], [0, 0, 1, 1], [], []>} : vector<16x32xf32>, vector<32x32xf32>, vector<16x32xf32> -> vector<16x32xf32>
    %c0_14 = arith.constant 0 : index
    %c0_15 = arith.constant 0 : index
    %14 = vector.load %arg7[%c0_14, %c0_15] : memref<1x32xf32, #tpu.memory_space<vmem>>, vector<1x32xf32>
    %15 = vector.broadcast %14 : vector<1x32xf32> to vector<16x32xf32>
    %16 = arith.addf %13, %15 : vector<16x32xf32>
    %cst_16 = arith.constant 0.353553385 : f32
    %17 = vector.broadcast %cst_16 : f32 to vector<16x32xf32>
    %18 = arith.mulf %6, %17 : vector<16x32xf32>
    %19 = vector.extract_strided_slice %18 {offsets = [0, 0], sizes = [16, 8], strides = [1, 1]} : vector<16x32xf32> to vector<16x8xf32>
    %20 = vector.shape_cast %19 : vector<16x8xf32> to vector<2x8x8xf32>
    %21 = vector.extract_strided_slice %11 {offsets = [0, 0], sizes = [16, 8], strides = [1, 1]} : vector<16x32xf32> to vector<16x8xf32>
    %22 = vector.shape_cast %21 : vector<16x8xf32> to vector<2x8x8xf32>
    %23 = vector.extract_strided_slice %16 {offsets = [0, 0], sizes = [16, 8], strides = [1, 1]} : vector<16x32xf32> to vector<16x8xf32>
    %24 = vector.shape_cast %23 : vector<16x8xf32> to vector<2x8x8xf32>
    "tpu.trace_start"() <{level = 10 : i32, message = "bqd,bkd->bqk"}> : () -> ()
    %cst_17 = arith.constant dense<0.000000e+00> : vector<2x8x8xf32>
    %25 = tpu.matmul %20, %22, %cst_17 {dimension_numbers = #tpu.dot_dimension_numbers<[2], [2], [1], [1], [0, 0, 0, 1, 1, 1], [0], [0]>} : vector<2x8x8xf32>, vector<2x8x8xf32>, vector<2x8x8xf32> -> vector<2x8x8xf32>
    "tpu.trace_stop"() : () -> ()
    %cst_18 = arith.constant dense<0xFF800000> : vector<2x8xf32>
    %26 = vector.multi_reduction <maximumf>, %25, %cst_18 [2] : vector<2x8x8xf32> to vector<2x8xf32>
    %27 = vector.shape_cast %26 : vector<2x8xf32> to vector<2x8x1xf32>
    %28 = vector.broadcast %27 : vector<2x8x1xf32> to vector<2x8x8xf32>
    %29 = arith.subf %25, %28 : vector<2x8x8xf32>
    %30 = math.exp %29 : vector<2x8x8xf32>
    %cst_19 = arith.constant dense<0.000000e+00> : vector<2x8xf32>
    %31 = vector.multi_reduction <add>, %30, %cst_19 [2] : vector<2x8x8xf32> to vector<2x8xf32>
    %32 = vector.shape_cast %31 : vector<2x8xf32> to vector<2x8x1xf32>
    %33 = tpu.reciprocal %32 : vector<2x8x1xf32> -> vector<2x8x1xf32>
    %34 = vector.broadcast %33 : vector<2x8x1xf32> to vector<2x8x8xf32>
    %35 = arith.mulf %30, %34 : vector<2x8x8xf32>
    "tpu.trace_start"() <{level = 10 : i32, message = "bqk,bkd->bqd"}> : () -> ()
    %cst_20 = arith.constant dense<0.000000e+00> : vector<2x8x8xf32>
    %36 = tpu.matmul %35, %24, %cst_20 {dimension_numbers = #tpu.dot_dimension_numbers<[2], [1], [1], [2], [0, 0, 0, 1, 1, 2], [0], [0]>} : vector<2x8x8xf32>, vector<2x8x8xf32>, vector<2x8x8xf32> -> vector<2x8x8xf32>
    "tpu.trace_stop"() : () -> ()
    %37 = vector.shape_cast %36 : vector<2x8x8xf32> to vector<16x8xf32>
    %38 = vector.extract_strided_slice %18 {offsets = [0, 8], sizes = [16, 8], strides = [1, 1]} : vector<16x32xf32> to vector<16x8xf32>
    %39 = vector.shape_cast %38 : vector<16x8xf32> to vector<2x8x8xf32>
    %40 = vector.extract_strided_slice %11 {offsets = [0, 8], sizes = [16, 8], strides = [1, 1]} : vector<16x32xf32> to vector<16x8xf32>
    %41 = vector.shape_cast %40 : vector<16x8xf32> to vector<2x8x8xf32>
    %42 = vector.extract_strided_slice %16 {offsets = [0, 8], sizes = [16, 8], strides = [1, 1]} : vector<16x32xf32> to vector<16x8xf32>
    %43 = vector.shape_cast %42 : vector<16x8xf32> to vector<2x8x8xf32>
    "tpu.trace_start"() <{level = 10 : i32, message = "bqd,bkd->bqk"}> : () -> ()
    %cst_21 = arith.constant dense<0.000000e+00> : vector<2x8x8xf32>
    %44 = tpu.matmul %39, %41, %cst_21 {dimension_numbers = #tpu.dot_dimension_numbers<[2], [2], [1], [1], [0, 0, 0, 1, 1, 1], [0], [0]>} : vector<2x8x8xf32>, vector<2x8x8xf32>, vector<2x8x8xf32> -> vector<2x8x8xf32>
    "tpu.trace_stop"() : () -> ()
    %cst_22 = arith.constant dense<0xFF800000> : vector<2x8xf32>
    %45 = vector.multi_reduction <maximumf>, %44, %cst_22 [2] : vector<2x8x8xf32> to vector<2x8xf32>
    %46 = vector.shape_cast %45 : vector<2x8xf32> to vector<2x8x1xf32>
    %47 = vector.broadcast %46 : vector<2x8x1xf32> to vector<2x8x8xf32>
    %48 = arith.subf %44, %47 : vector<2x8x8xf32>
    %49 = math.exp %48 : vector<2x8x8xf32>
    %cst_23 = arith.constant dense<0.000000e+00> : vector<2x8xf32>
    %50 = vector.multi_reduction <add>, %49, %cst_23 [2] : vector<2x8x8xf32> to vector<2x8xf32>
    %51 = vector.shape_cast %50 : vector<2x8xf32> to vector<2x8x1xf32>
    %52 = tpu.reciprocal %51 : vector<2x8x1xf32> -> vector<2x8x1xf32>
    %53 = vector.broadcast %52 : vector<2x8x1xf32> to vector<2x8x8xf32>
    %54 = arith.mulf %49, %53 : vector<2x8x8xf32>
    "tpu.trace_start"() <{level = 10 : i32, message = "bqk,bkd->bqd"}> : () -> ()
    %cst_24 = arith.constant dense<0.000000e+00> : vector<2x8x8xf32>
    %55 = tpu.matmul %54, %43, %cst_24 {dimension_numbers = #tpu.dot_dimension_numbers<[2], [1], [1], [2], [0, 0, 0, 1, 1, 2], [0], [0]>} : vector<2x8x8xf32>, vector<2x8x8xf32>, vector<2x8x8xf32> -> vector<2x8x8xf32>
    "tpu.trace_stop"() : () -> ()
    %56 = vector.shape_cast %55 : vector<2x8x8xf32> to vector<16x8xf32>
    %57 = vector.extract_strided_slice %18 {offsets = [0, 16], sizes = [16, 8], strides = [1, 1]} : vector<16x32xf32> to vector<16x8xf32>
    %58 = vector.shape_cast %57 : vector<16x8xf32> to vector<2x8x8xf32>
    %59 = vector.extract_strided_slice %11 {offsets = [0, 16], sizes = [16, 8], strides = [1, 1]} : vector<16x32xf32> to vector<16x8xf32>
    %60 = vector.shape_cast %59 : vector<16x8xf32> to vector<2x8x8xf32>
    %61 = vector.extract_strided_slice %16 {offsets = [0, 16], sizes = [16, 8], strides = [1, 1]} : vector<16x32xf32> to vector<16x8xf32>
    %62 = vector.shape_cast %61 : vector<16x8xf32> to vector<2x8x8xf32>
    "tpu.trace_start"() <{level = 10 : i32, message = "bqd,bkd->bqk"}> : () -> ()
    %cst_25 = arith.constant dense<0.000000e+00> : vector<2x8x8xf32>
    %63 = tpu.matmul %58, %60, %cst_25 {dimension_numbers = #tpu.dot_dimension_numbers<[2], [2], [1], [1], [0, 0, 0, 1, 1, 1], [0], [0]>} : vector<2x8x8xf32>, vector<2x8x8xf32>, vector<2x8x8xf32> -> vector<2x8x8xf32>
    "tpu.trace_stop"() : () -> ()
    %cst_26 = arith.constant dense<0xFF800000> : vector<2x8xf32>
    %64 = vector.multi_reduction <maximumf>, %63, %cst_26 [2] : vector<2x8x8xf32> to vector<2x8xf32>
    %65 = vector.shape_cast %64 : vector<2x8xf32> to vector<2x8x1xf32>
    %66 = vector.broadcast %65 : vector<2x8x1xf32> to vector<2x8x8xf32>
    %67 = arith.subf %63, %66 : vector<2x8x8xf32>
    %68 = math.exp %67 : vector<2x8x8xf32>
    %cst_27 = arith.constant dense<0.000000e+00> : vector<2x8xf32>
    %69 = vector.multi_reduction <add>, %68, %cst_27 [2] : vector<2x8x8xf32> to vector<2x8xf32>
    %70 = vector.shape_cast %69 : vector<2x8xf32> to vector<2x8x1xf32>
    %71 = tpu.reciprocal %70 : vector<2x8x1xf32> -> vector<2x8x1xf32>
    %72 = vector.broadcast %71 : vector<2x8x1xf32> to vector<2x8x8xf32>
    %73 = arith.mulf %68, %72 : vector<2x8x8xf32>
    "tpu.trace_start"() <{level = 10 : i32, message = "bqk,bkd->bqd"}> : () -> ()
    %cst_28 = arith.constant dense<0.000000e+00> : vector<2x8x8xf32>
    %74 = tpu.matmul %73, %62, %cst_28 {dimension_numbers = #tpu.dot_dimension_numbers<[2], [1], [1], [2], [0, 0, 0, 1, 1, 2], [0], [0]>} : vector<2x8x8xf32>, vector<2x8x8xf32>, vector<2x8x8xf32> -> vector<2x8x8xf32>
    "tpu.trace_stop"() : () -> ()
    %75 = vector.shape_cast %74 : vector<2x8x8xf32> to vector<16x8xf32>
    %76 = vector.extract_strided_slice %18 {offsets = [0, 24], sizes = [16, 8], strides = [1, 1]} : vector<16x32xf32> to vector<16x8xf32>
    %77 = vector.shape_cast %76 : vector<16x8xf32> to vector<2x8x8xf32>
    %78 = vector.extract_strided_slice %11 {offsets = [0, 24], sizes = [16, 8], strides = [1, 1]} : vector<16x32xf32> to vector<16x8xf32>
    %79 = vector.shape_cast %78 : vector<16x8xf32> to vector<2x8x8xf32>
    %80 = vector.extract_strided_slice %16 {offsets = [0, 24], sizes = [16, 8], strides = [1, 1]} : vector<16x32xf32> to vector<16x8xf32>
    %81 = vector.shape_cast %80 : vector<16x8xf32> to vector<2x8x8xf32>
    "tpu.trace_start"() <{level = 10 : i32, message = "bqd,bkd->bqk"}> : () -> ()
    %cst_29 = arith.constant dense<0.000000e+00> : vector<2x8x8xf32>
    %82 = tpu.matmul %77, %79, %cst_29 {dimension_numbers = #tpu.dot_dimension_numbers<[2], [2], [1], [1], [0, 0, 0, 1, 1, 1], [0], [0]>} : vector<2x8x8xf32>, vector<2x8x8xf32>, vector<2x8x8xf32> -> vector<2x8x8xf32>
    "tpu.trace_stop"() : () -> ()
    %cst_30 = arith.constant dense<0xFF800000> : vector<2x8xf32>
    %83 = vector.multi_reduction <maximumf>, %82, %cst_30 [2] : vector<2x8x8xf32> to vector<2x8xf32>
    %84 = vector.shape_cast %83 : vector<2x8xf32> to vector<2x8x1xf32>
    %85 = vector.broadcast %84 : vector<2x8x1xf32> to vector<2x8x8xf32>
    %86 = arith.subf %82, %85 : vector<2x8x8xf32>
    %87 = math.exp %86 : vector<2x8x8xf32>
    %cst_31 = arith.constant dense<0.000000e+00> : vector<2x8xf32>
    %88 = vector.multi_reduction <add>, %87, %cst_31 [2] : vector<2x8x8xf32> to vector<2x8xf32>
    %89 = vector.shape_cast %88 : vector<2x8xf32> to vector<2x8x1xf32>
    %90 = tpu.reciprocal %89 : vector<2x8x1xf32> -> vector<2x8x1xf32>
    %91 = vector.broadcast %90 : vector<2x8x1xf32> to vector<2x8x8xf32>
    %92 = arith.mulf %87, %91 : vector<2x8x8xf32>
    "tpu.trace_start"() <{level = 10 : i32, message = "bqk,bkd->bqd"}> : () -> ()
    %cst_32 = arith.constant dense<0.000000e+00> : vector<2x8x8xf32>
    %93 = tpu.matmul %92, %81, %cst_32 {dimension_numbers = #tpu.dot_dimension_numbers<[2], [1], [1], [2], [0, 0, 0, 1, 1, 2], [0], [0]>} : vector<2x8x8xf32>, vector<2x8x8xf32>, vector<2x8x8xf32> -> vector<2x8x8xf32>
    "tpu.trace_stop"() : () -> ()
    %94 = vector.shape_cast %93 : vector<2x8x8xf32> to vector<16x8xf32>
    %95 = tpu.concatenate %37, %56, %75, %94 in 1 : vector<16x8xf32>, vector<16x8xf32>, vector<16x8xf32>, vector<16x8xf32> -> vector<16x32xf32>
    %c0_33 = arith.constant 0 : index
    %c0_34 = arith.constant 0 : index
    %96 = vector.load %arg8[%c0_33, %c0_34] : memref<32x32xf32, #tpu.memory_space<vmem>>, vector<32x32xf32>
    %cst_35 = arith.constant dense<0.000000e+00> : vector<16x32xf32>
    %97 = tpu.matmul %95, %96, %cst_35 {dimension_numbers = #tpu.dot_dimension_numbers<[1], [0], [0], [1], [0, 0, 1, 1], [], []>} : vector<16x32xf32>, vector<32x32xf32>, vector<16x32xf32> -> vector<16x32xf32>
    %c0_36 = arith.constant 0 : index
    %c0_37 = arith.constant 0 : index
    %98 = vector.load %arg9[%c0_36, %c0_37] : memref<1x32xf32, #tpu.memory_space<vmem>>, vector<1x32xf32>
    %99 = vector.broadcast %98 : vector<1x32xf32> to vector<16x32xf32>
    %100 = arith.addf %97, %99 : vector<16x32xf32>
    %101 = vector.shape_cast %100 : vector<16x32xf32> to vector<2x8x32xf32>
    %c0_38 = arith.constant 0 : index
    %c0_39 = arith.constant 0 : index
    %c0_40 = arith.constant 0 : index
    %102 = vector.load %arg10[%c0_38, %c0_39, %c0_40] : memref<2x8x32xf32, #tpu.memory_space<vmem>>, vector<2x8x32xf32>
    tpu.vector_store %arg10[%c0_38, %c0_39, %c0_40], %101 {strides = array<i32>} : memref<2x8x32xf32, #tpu.memory_space<vmem>>, vector<2x8x32xf32>,
    return
  }
  func.func @transform_0(%arg0: i32) -> (i32, i32, i32) {
    %c0_i32 = arith.constant 0 : i32
    %c0_i32_0 = arith.constant 0 : i32
    %c0_i32_1 = arith.constant 0 : i32
    return %arg0, %c0_i32, %c0_i32_0 : i32, i32, i32
  }
  func.func @transform_1(%arg0: i32) -> (i32, i32) {
    %c0_i32 = arith.constant 0 : i32
    %c0_i32_0 = arith.constant 0 : i32
    %c0_i32_1 = arith.constant 0 : i32
    return %c0_i32, %c0_i32_0 : i32, i32
  }
  func.func @transform_2(%arg0: i32) -> (i32, i32) {
    %c0_i32 = arith.constant 0 : i32
    %c0_i32_0 = arith.constant 0 : i32
    %c0_i32_1 = arith.constant 0 : i32
    return %c0_i32, %c0_i32_0 : i32, i32
  }
  func.func @transform_3(%arg0: i32) -> (i32, i32) {
    %c0_i32 = arith.constant 0 : i32
    %c0_i32_0 = arith.constant 0 : i32
    %c0_i32_1 = arith.constant 0 : i32
    return %c0_i32, %c0_i32_0 : i32, i32
  }
  func.func @transform_4(%arg0: i32) -> (i32, i32) {
    %c0_i32 = arith.constant 0 : i32
    %c0_i32_0 = arith.constant 0 : i32
    %c0_i32_1 = arith.constant 0 : i32
    return %c0_i32, %c0_i32_0 : i32, i32
  }
  func.func @transform_5(%arg0: i32) -> (i32, i32) {
    %c0_i32 = arith.constant 0 : i32
    %c0_i32_0 = arith.constant 0 : i32
    %c0_i32_1 = arith.constant 0 : i32
    return %c0_i32, %c0_i32_0 : i32, i32
  }
  func.func @transform_6(%arg0: i32) -> (i32, i32) {
    %c0_i32 = arith.constant 0 : i32
    %c0_i32_0 = arith.constant 0 : i32
    %c0_i32_1 = arith.constant 0 : i32
    return %c0_i32, %c0_i32_0 : i32, i32
  }
  func.func @transform_7(%arg0: i32) -> (i32, i32) {
    %c0_i32 = arith.constant 0 : i32
    %c0_i32_0 = arith.constant 0 : i32
    %c0_i32_1 = arith.constant 0 : i32
    return %c0_i32, %c0_i32_0 : i32, i32
  }
  func.func @transform_8(%arg0: i32) -> (i32, i32) {
    %c0_i32 = arith.constant 0 : i32
    %c0_i32_0 = arith.constant 0 : i32
    %c0_i32_1 = arith.constant 0 : i32
    return %c0_i32, %c0_i32_0 : i32, i32
  }
  func.func @transform_9(%arg0: i32) -> (i32, i32, i32) {
    %c0_i32 = arith.constant 0 : i32
    %c0_i32_0 = arith.constant 0 : i32
    %c0_i32_1 = arith.constant 0 : i32
    return %arg0, %c0_i32, %c0_i32_0 : i32, i32, i32
  }
}

</mosaic_0001>

<bundles_post_ra>
// kernel: tpu_custom_call.1
= control target key start
LH: loop header
LB: loop body
LE: loop exit
PB: predicated region body
PF: predicated region fallthrough
CT: control target
= control target key end

     0   :  { %14 = vsyncpa [#allocation3], 0  ;;  %s2796_s0 = inlined_call_operand.hbm [shape: f32[2,8,32], index: 0, kind: input, shape index: {}]   ;;  %s2797_s1 = inlined_call_operand.hbm [shape: f32[32,32], index: 1, kind: input, shape index: {}]   ;;  %s2798_s2 = inlined_call_operand.hbm [shape: f32[1,32], index: 2, kind: input, shape index: {}]   ;;  %s2799_s3 = inlined_call_operand.hbm [shape: f32[32,32], index: 3, kind: input, shape index: {}]   ;;  %s2800_s4 = inlined_call_operand.hbm [shape: f32[1,32], index: 4, kind: input, shape index: {}]   ;;  %s2801_s5 = inlined_call_operand.hbm [shape: f32[32,32], index: 5, kind: input, shape index: {}]   ;;  %s2802_s6 = inlined_call_operand.hbm [shape: f32[1,32], index: 6, kind: input, shape index: {}]   ;;  %s2803_s7 = inlined_call_operand.hbm [shape: f32[32,32], index: 7, kind: input, shape index: {}]   ;;  %s2804_s8 = inlined_call_operand.hbm [shape: f32[1,32], index: 8, kind: input, shape index: {}]   ;;  %s2805_s9 = inlined_call_operand.hbm [shape: f32[2,8,32], index: 9, kind: output, shape index: {}]  }
   0x1   :  { %15 = vsyncpa [#allocation6], 0 }
   0x2   :  { %16 = vsyncpa [#allocation9], 0 }
   0x3   :  { %17 = vsyncpa [#allocation12], 0 }
   0x4   :  { %18 = vsyncpa [#allocation15], 0 }
   0x5   :  { %19 = vsyncpa [#allocation4], 0  ;;  %s2407_s30 = smov [#allocation5]   ;;  %s2408_s11 = smov [#allocation8]  }
   0x6   :  { %s37_s10 = sshll.u32 %s2407_s30, 4  ;;  %s59_s12 = sshll.u32 %s2408_s11, 4  ;;  %s38_s10 = int_to_ptr.vmem [resolvable:$true] %s37_s10  ;;  %s2476_s12 = int_to_ptr.vmem [resolvable:$true] %s59_s12 }
   0x7   :  { %s2175_s15 = scalar_lea.hbm %s2797_s1, 512 }
   0x8   :  { %p2176_p0 = scmp.ne.s32.totalorder %s2797_s1, %s2175_s15  ;;  %p2179_p1 = scmp.lt.u32.totalorder %s2175_s15, %s2797_s1 }
   0xa   :  { %p2181_p2 = pnand %p2179_p1, %p2176_p0 }
   0xc   :  { %2184 = shalt.err (!%p2181_p2)
}
   0xd   :  { %s2185_s20 = scalar_lea.vmem %s38_s10, 512  ;;  %p2190_p4 = scmp.lt.s32.totalorder %s38_s10, %s38_s10 }
   0xe   :  { %p2186_p3 = scmp.ne.s32.totalorder %s38_s10, %s2185_s20  ;;  %p2191_p5 = scmp.lt.s32.totalorder %s2185_s20, %s2185_s20 }
  0x10   :  { %p2192_p6 = por %p2191_p5, %p2190_p4 }
  0x12   :  { %p2193_p7 = pnand %p2192_p6, %p2186_p3 }
  0x14   :  { %2196 = shalt.err (!%p2193_p7)
}
  0x15   :  { %s2409_s21 = smov 128   ;;  %s2410_s22 = smov 8  }
  0x16   :  { %43 = dma.hbm_to_vmem [thread:$0]  %s2797_s1, 512, %s38_s10, [#allocation6], %s2409_s21, %s2409_s21, %s2410_s22  }
  0x17   :  { %s2197_s27 = scalar_lea.hbm %s2799_s3, 512 }
  0x18   :  { %p2198_p8 = scmp.ne.s32.totalorder %s2799_s3, %s2197_s27  ;;  %p2201_p9 = scmp.lt.u32.totalorder %s2197_s27, %s2799_s3 }
  0x1a   :  { %p2203_p10 = pnand %p2201_p9, %p2198_p8 }
  0x1c   :  { %2206 = shalt.err (!%p2203_p10)
}
  0x1d   :  { %s2207_s13 = scalar_lea.vmem %s2476_s12, 512  ;;  %p2212_p12 = scmp.lt.s32.totalorder %s2476_s12, %s2476_s12 }
  0x1e   :  { %p2208_p11 = scmp.ne.s32.totalorder %s2476_s12, %s2207_s13  ;;  %p2213_p13 = scmp.lt.s32.totalorder %s2207_s13, %s2207_s13 }
  0x20   :  { %p2214_p0 = por %p2213_p13, %p2212_p12 }
  0x22   :  { %p2215_p1 = pnand %p2214_p0, %p2208_p11 }
  0x24   :  { %2218 = shalt.err (!%p2215_p1)
}
  0x25   :  { %65 = dma.hbm_to_vmem [thread:$0]  %s2799_s3, 512, %s2476_s12, [#allocation9], %s2409_s21, %s2409_s21, %s2410_s22  }
  0x26   :  { %s2411_s14 = smov [#allocation11]   ;;  %s2412_s16 = smov [#allocation14]  }
  0x27   :  { %s81_s15 = sshll.u32 %s2411_s14, 4  ;;  %s103_s17 = sshll.u32 %s2412_s16, 4  ;;  %s82_s15 = int_to_ptr.vmem [resolvable:$true] %s81_s15  ;;  %s2513_s17 = int_to_ptr.vmem [resolvable:$true] %s103_s17 }
  0x28   :  { %s2219_s20 = scalar_lea.hbm %s2801_s5, 512 }
  0x29   :  { %p2220_p2 = scmp.ne.s32.totalorder %s2801_s5, %s2219_s20  ;;  %p2223_p3 = scmp.lt.u32.totalorder %s2219_s20, %s2801_s5 }
  0x2b   :  { %p2225_p4 = pnand %p2223_p3, %p2220_p2 }
  0x2d   :  { %2228 = shalt.err (!%p2225_p4)
}
  0x2e   :  { %s2229_s3 = scalar_lea.vmem %s82_s15, 512  ;;  %p2234_p6 = scmp.lt.s32.totalorder %s82_s15, %s82_s15 }
  0x2f   :  { %p2230_p5 = scmp.ne.s32.totalorder %s82_s15, %s2229_s3  ;;  %p2235_p7 = scmp.lt.s32.totalorder %s2229_s3, %s2229_s3 }
  0x31   :  { %p2236_p8 = por %p2235_p7, %p2234_p6 }
  0x33   :  { %p2237_p9 = pnand %p2236_p8, %p2230_p5 }
  0x35   :  { %2240 = shalt.err (!%p2237_p9)
}
  0x36   :  { %87 = dma.hbm_to_vmem [thread:$0]  %s2801_s5, 512, %s82_s15, [#allocation12], %s2409_s21, %s2409_s21, %s2410_s22  }
  0x37   :  { %s2241_s30 = scalar_lea.hbm %s2803_s7, 512 }
  0x38   :  { %p2242_p10 = scmp.ne.s32.totalorder %s2803_s7, %s2241_s30  ;;  %p2245_p11 = scmp.lt.u32.totalorder %s2241_s30, %s2803_s7 }
  0x3a   :  { %p2247_p12 = pnand %p2245_p11, %p2242_p10 }
  0x3c   :  { %2250 = shalt.err (!%p2247_p12)
}
  0x3d   :  { %s2251_s14 = scalar_lea.vmem %s2513_s17, 512  ;;  %p2256_p0 = scmp.lt.s32.totalorder %s2513_s17, %s2513_s17 }
  0x3e   :  { %p2252_p13 = scmp.ne.s32.totalorder %s2513_s17, %s2251_s14  ;;  %p2257_p1 = scmp.lt.s32.totalorder %s2251_s14, %s2251_s14 }
  0x40   :  { %p2258_p2 = por %p2257_p1, %p2256_p0 }
  0x42   :  { %p2259_p3 = pnand %p2258_p2, %p2252_p13 }
  0x44   :  { %2262 = shalt.err (!%p2259_p3)
}
  0x45   :  { %109 = dma.hbm_to_vmem [thread:$0]  %s2803_s7, 512, %s2513_s17, [#allocation15], %s2409_s21, %s2409_s21, %s2410_s22  }
  0x46   :  { %s2413_s16 = smov [#allocation2]   ;;  %s2414_s19 = smov [#allocation7]  }
  0x47   :  { %s25_s18 = sshll.u32 %s2413_s16, 4  ;;  %s50_s20 = sshll.u32 %s2414_s19, 4  ;;  %s26_s18 = int_to_ptr.vmem [resolvable:$true] %s25_s18  ;;  %s51_s20 = int_to_ptr.vmem [resolvable:$true] %s50_s20 }
  0x48   :  { %s2263_s25 = scalar_lea.hbm %s2796_s0, 256 }
  0x49   :  { %p2264_p4 = scmp.ne.s32.totalorder %s2796_s0, %s2263_s25  ;;  %p2267_p5 = scmp.lt.u32.totalorder %s2263_s25, %s2796_s0 }
  0x4b   :  { %p2269_p6 = pnand %p2267_p5, %p2264_p4 }
  0x4d   :  { %2272 = shalt.err (!%p2269_p6)
}
  0x4e   :  { %s2273_s7 = scalar_lea.vmem %s26_s18, 256  ;;  %p2278_p8 = scmp.lt.s32.totalorder %s26_s18, %s26_s18 }
  0x4f   :  { %p2274_p7 = scmp.ne.s32.totalorder %s26_s18, %s2273_s7  ;;  %p2279_p9 = scmp.lt.s32.totalorder %s2273_s7, %s2273_s7 }
  0x51   :  { %p2280_p10 = por %p2279_p9, %p2278_p8 }
  0x53   :  { %p2281_p11 = pnand %p2280_p10, %p2274_p7 }
  0x55   :  { %2284 = shalt.err (!%p2281_p11)
}
  0x56   :  { %31 = dma.hbm_to_vmem [thread:$0]  %s2796_s0, 256, %s26_s18, [#allocation3], %s2409_s21, %s2409_s21, %s2410_s22  }
  0x57   :  { %s2285_s11 = scalar_lea.hbm %s2798_s2, 16 }
  0x58   :  { %p2286_p12 = scmp.ne.s32.totalorder %s2798_s2, %s2285_s11  ;;  %p2289_p13 = scmp.lt.u32.totalorder %s2285_s11, %s2798_s2 }
  0x5a   :  { %p2291_p0 = pnand %p2289_p13, %p2286_p12 }
  0x5c   :  { %2294 = shalt.err (!%p2291_p0)
}
  0x5d   :  { %s2295_s5 = scalar_lea.vmem %s51_s20, 16  ;;  %s2299_s15 = scalar_lea.vmem %s51_s20, 32 }
  0x5e   :  { %p2296_p1 = scmp.ne.s32.totalorder %s51_s20, %s2295_s5  ;;  %p2300_p2 = scmp.lt.s32.totalorder %s51_s20, %s51_s20 }
  0x5f   :  { %p2301_p3 = scmp.lt.s32.totalorder %s2299_s15, %s2295_s5 }
  0x61   :  { %p2302_p4 = por %p2301_p3, %p2300_p2 }
  0x63   :  { %p2303_p5 = pnand %p2302_p4, %p2296_p1 }
  0x65   :  { %2306 = shalt.err (!%p2303_p5)
}
  0x66   :  { %53 = dma.hbm_to_vmem [thread:$0]  %s2798_s2, 16, %s51_s20, [#allocation6]  }
  0x67   :  { %s2415_s18 = smov [#allocation10]   ;;  %s2416_s23 = smov [#allocation13]  }
  0x68   :  { %s72_s19 = sshll.u32 %s2415_s18, 4  ;;  %s94_s24 = sshll.u32 %s2416_s23, 4  ;;  %s73_s19 = int_to_ptr.vmem [resolvable:$true] %s72_s19  ;;  %s95_s24 = int_to_ptr.vmem [resolvable:$true] %s94_s24 }
  0x69   :  { %s2307_s3 = scalar_lea.hbm %s2800_s4, 16 }
  0x6a   :  { %p2308_p6 = scmp.ne.s32.totalorder %s2800_s4, %s2307_s3  ;;  %p2311_p7 = scmp.lt.u32.totalorder %s2307_s3, %s2800_s4 }
  0x6c   :  { %p2313_p8 = pnand %p2311_p7, %p2308_p6 }
  0x6e   :  { %2316 = shalt.err (!%p2313_p8)
}
  0x6f   :  { %s2317_s2 = scalar_lea.vmem %s73_s19, 16  ;;  %s2321_s20 = scalar_lea.vmem %s73_s19, 32 }
  0x70   :  { %p2318_p9 = scmp.ne.s32.totalorder %s73_s19, %s2317_s2  ;;  %p2322_p10 = scmp.lt.s32.totalorder %s73_s19, %s73_s19 }
  0x71   :  { %p2323_p11 = scmp.lt.s32.totalorder %s2321_s20, %s2317_s2 }
  0x73   :  { %p2324_p12 = por %p2323_p11, %p2322_p10 }
  0x75   :  { %p2325_p13 = pnand %p2324_p12, %p2318_p9 }
  0x77   :  { %2328 = shalt.err (!%p2325_p13)
}
  0x78   :  { %75 = dma.hbm_to_vmem [thread:$0]  %s2800_s4, 16, %s73_s19, [#allocation9]  }
  0x79   :  { %s2329_s13 = scalar_lea.hbm %s2802_s6, 16 }
  0x7a   :  { %p2330_p0 = scmp.ne.s32.totalorder %s2802_s6, %s2329_s13  ;;  %p2333_p1 = scmp.lt.u32.totalorder %s2329_s13, %s2802_s6 }
  0x7c   :  { %p2335_p2 = pnand %p2333_p1, %p2330_p0 }
  0x7e   :  { %2338 = shalt.err (!%p2335_p2)
}
  0x7f   :  { %s2339_s15 = scalar_lea.vmem %s95_s24, 16  ;;  %s2343_s0 = scalar_lea.vmem %s95_s24, 32 }
  0x80   :  { %p2340_p3 = scmp.ne.s32.totalorder %s95_s24, %s2339_s15  ;;  %p2344_p4 = scmp.lt.s32.totalorder %s95_s24, %s95_s24 }
  0x81   :  { %p2345_p5 = scmp.lt.s32.totalorder %s2343_s0, %s2339_s15 }
  0x83   :  { %p2346_p6 = por %p2345_p5, %p2344_p4 }
  0x85   :  { %p2347_p7 = pnand %p2346_p6, %p2340_p3 }
  0x87   :  { %2350 = shalt.err (!%p2347_p7)
}
  0x88   :  { %97 = dma.hbm_to_vmem [thread:$0]  %s2802_s6, 16, %s95_s24, [#allocation12]  }
  0x89   :  { %s2417_s18 = smov [#allocation16]   ;;  %s2351_s26 = scalar_lea.hbm %s2804_s8, 16 }
  0x8a   :  { %s116_s19 = sshll.u32 %s2417_s18, 4  ;;  %p2352_p8 = scmp.ne.s32.totalorder %s2804_s8, %s2351_s26  ;;  %s117_s19 = int_to_ptr.vmem [resolvable:$true] %s116_s19 }
  0x8b   :  { %p2355_p9 = scmp.lt.u32.totalorder %s2351_s26, %s2804_s8 }
  0x8d   :  { %p2357_p10 = pnand %p2355_p9, %p2352_p8 }
  0x8f   :  { %2360 = shalt.err (!%p2357_p10)
}
  0x90   :  { %s2361_s17 = scalar_lea.vmem %s117_s19, 16  ;;  %s2365_s6 = scalar_lea.vmem %s117_s19, 32 }
  0x91   :  { %p2362_p11 = scmp.ne.s32.totalorder %s117_s19, %s2361_s17  ;;  %p2366_p12 = scmp.lt.s32.totalorder %s117_s19, %s117_s19 }
  0x92   :  { %p2367_p13 = scmp.lt.s32.totalorder %s2365_s6, %s2361_s17 }
  0x94   :  { %p2368_p0 = por %p2367_p13, %p2366_p12 }
  0x96   :  { %p2369_p1 = pnand %p2368_p0, %p2362_p11 }
  0x98   :  { %2372 = shalt.err (!%p2369_p1)
}
  0x99   :  { %119 = dma.hbm_to_vmem [thread:$0]  %s2804_s8, 16, %s117_s19, [#allocation15]  }
  0x9a   :  { %2395 = dma.done.wait [#allocation3], 256  }
  0x9b   :  { %2396 = vsyncadd [#allocation3], 4294967040 }
  0x9c   :  { %2397 = dma.done.wait [#allocation6], 528  }
  0x9d   :  { %2398 = vsyncadd [#allocation6], 4294966768 }
  0x9e   :  { %2399 = dma.done.wait [#allocation9], 528  }
  0x9f   :  { %2400 = vsyncadd [#allocation9], 4294966768 }
  0xa0   :  { %2401 = dma.done.wait [#allocation12], 528  }
  0xa1   :  { %2402 = vsyncadd [#allocation12], 4294966768 }
  0xa2   :  { %2403 = dma.done.wait [#allocation15], 528  }
  0xa3   :  { %2404 = vsyncadd [#allocation15], 4294966768  ;;  %v149_v0 = vld [vmem:[#allocation5] sm:$0xff]  ;;  %v150_v1 = vld [vmem:[#allocation5 + $0x8] sm:$0xff]  ;;  %vm160_vm0 = vcmask 261120   ;;  %v2418_v14 = vmov 0.0  }
  0xa4   :  { %v242_v2 = vld [vmem:[#allocation8] sm:$0xff]  ;;  %v2092_v3 = vpack.c.bf16 %v150_v1, %v149_v0  ;;  %v243_v4 = vld [vmem:[#allocation8 + $0x8] sm:$0xff]  ;;  %v152_v6 = vld [vmem:[#allocation5 + $0x18] sm:$0xff]  ;;  %vm2419_vm1 = vmmov 0   ;;  %vm416_vm2 = vcmask 64512   ;;  %s2420_s8 = smov 120  }
  0xa5   :  { %v151_v5 = vld [vmem:[#allocation5 + $0x10] sm:$0xff]  ;;  %v2100_v7 = vpack.c.bf16 %v243_v4, %v242_v2  ;;  %v245_v10 = vld [vmem:[#allocation8 + $0x18] sm:$0xff]  ;;  %v1879_v16 = vld [vmem:[#allocation10] ss:$0 sm:$0xff]  ;;  %s2421_s20 = smov 112   ;;  %s2422_s28 = smov 104  }
  0xa6   :  { %v2096_v8 = vpack.c.bf16 %v152_v6, %v151_v5  ;;  %v244_v9 = vld [vmem:[#allocation8 + $0x10] sm:$0xff]  ;;  %2093 = vmatprep.subr.bf16.mxu0 %v2092_v3  ;;  %v1876_v15 = vld [vmem:[#allocation7] ss:$0 sm:$0xff]  ;;  %v328_v27 = vld [vmem:[#allocation11] sm:$0xff]  ;;  %s2423_s29 = smov 16   ;;  %s2424_s30 = smov 24  }
  0xa7   :  { %v147_v11 = vld [vmem:[#allocation2] sm:$0xff]  ;;  %v2104_v12 = vpack.c.bf16 %v245_v10, %v244_v9  ;;  %2101 = vmatprep.subr.bf16.mxu1 %v2100_v7  ;;  %2095 = vmatpush3.bf16.msra.mxu0 %v2092_v3  ;;  %v148_v13 = vld [vmem:[#allocation2 + $0x8] sm:$0xff]  ;;  %v1882_v53 = vld [vmem:[#allocation13] ss:$0 sm:$0xff]  ;;  %vm1758_vm3 = vcmask 195584   ;;  %vm1755_vm4 = vcmask 130048  }
  0xa8   :  { %1976 = vmatprep.mubr.msk.f32.mxu0 %vm160_vm0, %v147_v11  ;;  %2103 = vmatpush3.bf16.msra.mxu1 %v2100_v7  ;;  %v329_v28 = vld [vmem:[#allocation11 + $0x8] sm:$0xff]  ;;  %v330_v29 = vld [vmem:[#allocation11 + $0x10] sm:$0xff]  ;;  %v331_v31 = vld [vmem:[#allocation11 + $0x18] sm:$0xff]  ;;  %s2425_s11 = smov [#allocation17]  }
  0xa9   :  { %2097 = vmatprep.subr.bf16.mxu0 %v2096_v8  ;;  %2105 = vmatprep.subr.bf16.mxu1 %v2104_v12  ;;  %v2108_v30 = vpack.c.bf16 %v329_v28, %v328_v27  ;;  %v2112_v32 = vpack.c.bf16 %v331_v31, %v330_v29  ;;  %s1860_s13 = sshll.u32 %s2425_s11, 4  ;;  %s1861_s13 = int_to_ptr.vmem [resolvable:$true] %s1860_s13 }
  0xaa   :  { %1987 = vmatprep.mubr.msk.f32.mxu1 %vm160_vm0, %v147_v11  ;;  %s2373_s1 = scalar_lea.vmem %s1861_s13, 256  ;;  %p2378_p3 = scmp.lt.s32.totalorder %s1861_s13, %s1861_s13 }
  0xab   :  { %2099 = vmatpush3.bf16.msra.mxu0 %v2096_v8  ;;  %p2374_p2 = scmp.ne.s32.totalorder %s1861_s13, %s2373_s1  ;;  %p2379_p4 = scmp.lt.s32.totalorder %s2373_s1, %s2373_s1 }
  0xac   :  { %2107 = vmatpush3.bf16.msra.mxu1 %v2104_v12  ;;  %2109 = vmatprep.subr.bf16.mxu0 %v2108_v30 }
  0xad   :  { %2001 = vmatprep.subr.mxu1 %v2418_v14  ;;  %p2380_p5 = por %p2379_p4, %p2378_p3 }
  0xae   :  { %1977 = vmatmul.mubr.msk.f32.vlgmr.msra.gmra.mrb[0].mxu0 %vm160_vm0, %v148_v13 }
  0xaf   :  { %1988 = vmatmul.mubr.msk.f32.vlgmr.msra.gmra.mrb[0].mxu1 %vm160_vm0, %v148_v13  ;;  %1998 = vmatprep.mubr.msk.f32.mxu0 %vm160_vm0, %v147_v11  ;;  %p2381_p6 = pnand %p2380_p5, %p2374_p2 }
  0xb0   :  { %2003 = vmatprep.mubr.msk.f32.mxu1 %vm2419_vm1, %v2418_v14  ;;  %2111 = vmatpush3.bf16.msra.mxu0 %v2108_v30 }
  0xb1   :  { %2113 = vmatprep.subr.bf16.mxu0 %v2112_v32 }
  0xb4   :  { %2115 = vmatpush3.bf16.msra.mxu0 %v2112_v32 }
  0xb5   :  { %2021 = vmatprep.subr.mxu0 %v2418_v14 }
  0xb7   :  { %1999 = vmatmul.mubr.msk.f32.vlgmr.msra.gmra.mrb[2].mxu0 %vm160_vm0, %v148_v13 }
  0xb8   :  { %2023 = vmatprep.mubr.msk.f32.mxu0 %vm2419_vm1, %v2418_v14 }
 0x181   :  { %v1978_v17 = vpop.f32.mrb[0].mxu0 }
 0x182   :  { %v1989_v18 = vpop.f32.mrb[0].mxu1  ;;  %v233_v19 = vpop.f32.mrb[1].mxu0  ;;  %v239_v25 = vadd.f32 %v1978_v17, %v1876_v15 }
 0x183   :  { %v2621_v20 = vadd.f32 %v1989_v18, %v1879_v16  ;;  %v234_v21 = vadd.f32 %v1876_v15, %v233_v19  ;;  %v319_v22 = vpop.f32.mrb[1].mxu1 }
 0x184   :  { %v2623_v23 = vadd.f32 %v1879_v16, %v319_v22  ;;  %v2640_v26 = vmul.f32 0.35355338, %v239_v25 }
 0x185   :  { %v2625_v24 = vmul.f32 0.35355338, %v234_v21  ;;  %817 = vrot.lane.b32.xlu1 %v2621_v20, %s2420_s8 }
 0x186   :  { %2002 = vmatpush3.xpose.msk.msra.mxu1 %vm416_vm2, %v2623_v23 }
 0x187   :  { %2006 = vmatprep.subr.mxu1 %v2418_v14 }
 0x189   :  { %737 = vrot.lane.b32.xlu1 %v2625_v24, %s2420_s8  ;;  %2004 = vmatmul.mubr.msk.f32.vlgmr.msra.gmra.mrb[2].mxu1 %vm416_vm2, %v2625_v24 }
 0x18a   :  { %2007 = vmatpush3.xpose.msk.msra.mxu1 %vm416_vm2, %v2621_v20  ;;  %2008 = vmatprep.mubr.msk.f32.mxu1 %vm2419_vm1, %v2418_v14  ;;  %v2000_v52 = vpop.f32.mrb[2].mxu0 }
 0x18b   :  { %2011 = vmatprep.subr.mxu1 %v2418_v14  ;;  %v405_v54 = vpop.f32.mrb[3].mxu0  ;;  %v2664_v55 = vadd.f32 %v2000_v52, %v1882_v53 }
 0x18c   :  { %v2666_v56 = vadd.f32 %v1882_v53, %v405_v54 }
 0x18d   :  { %2009 = vmatmul.mubr.msk.f32.vlgmr.msra.gmra.mrb[4].mxu1 %vm416_vm2, %v2640_v26 }
 0x18e   :  { %2013 = vmatprep.mubr.msk.f32.mxu1 %vm2419_vm1, %v2418_v14  ;;  %2012 = vmatpush3.msra.mxu1 %v2666_v56 }
 0x18f   :  { %2016 = vmatprep.subr.mxu1 %v2418_v14 }
 0x1f7   :  { %v818_v43 = vpop.permute.xlu1 %817 }
 0x1fb   :  { %v738_v47 = vpop.permute.xlu1 %737 }
 0x25c   :  { %v489_v33 = vpop.f32.mrb[2].mxu1 }
 0x25d   :  { %v2005_v34 = vpop.f32.mrb[3].mxu1  ;;  %v569_v35 = vsel %vm416_vm2, %v489_v33, -inf }
 0x25e   :  { %570 = vmax.xlane.f32.xlu0 %v569_v35 }
 0x260   :  { %v565_v36 = vpop.f32.mrb[4].mxu1 }
 0x261   :  { %v2010_v37 = vpop.f32.mrb[5].mxu1  ;;  %v572_v38 = vsel %vm416_vm2, %v565_v36, -inf }
 0x262   :  { %573 = vmax.xlane.f32.xlu0 %v572_v38 }
 0x278   :  { %739 = vrot.lane.b32.xlu0 %v2623_v23, %s2420_s8 }
 0x2eb   :  { %v571_v39 = vpop.xlane.xlu0 %570 }
 0x2ec   :  { %v575_v40 = vsub.f32 %v489_v33, %v571_v39 }
 0x2ee   :  { %v577_v41 = vmul.f32 1.442695, %v575_v40 }
 0x2ef   :  { %v574_v42 = vpop.xlane.xlu0 %573 }
 0x2f0   :  { %2143 = vpow2.f32 %v577_v41  ;;  %v576_v44 = vsub.f32 %v565_v36, %v574_v42 }
 0x2f2   :  { %v579_v45 = vmul.f32 1.442695, %v576_v44 }
 0x2f3   :  { %v740_v46 = vpop.permute.xlu0 %739 }
 0x2f4   :  { %2145 = vpow2.f32 %v579_v45  ;;  %2022 = vmatpush3.xpose.msk.msra.mxu0 %vm416_vm2, %v740_v46 }
 0x2f5   :  { %2031 = vmatprep.subr.mxu0 %v2418_v14 }
 0x2f7   :  { %2024 = vmatmul.mubr.msk.f32.vlgmr.msra.gmra.mrb[4].mxu0 %vm416_vm2, %v738_v47 }
 0x2f8   :  { %2033 = vmatprep.mubr.msk.f32.mxu0 %vm2419_vm1, %v2418_v14 }
 0x2fa   :  { %v2144_v48 = vpop.eup %2143 }
 0x2fb   :  { %v581_v49 = vsel %vm416_vm2, %v2144_v48, 0.0 }
 0x2fc   :  { %582 = vadd.xlane.f32.xlu1 %v581_v49 }
 0x2fe   :  { %v2146_v50 = vpop.eup %2145 }
 0x2ff   :  { %v584_v51 = vsel %vm416_vm2, %v2146_v50, 0.0 }
 0x300   :  { %585 = vadd.xlane.f32.xlu1 %v584_v51 }
 0x311   :  { %815 = vrot.lane.b32.xlu1 %v2640_v26, %s2420_s8 }
 0x389   :  { %v583_v57 = vpop.xlane.xlu1 %582 }
 0x38a   :  { %2147 = vrcp.f32 %v583_v57 }
 0x38d   :  { %v586_v58 = vpop.xlane.xlu1 %585 }
 0x38e   :  { %2149 = vrcp.f32 %v586_v58 }
 0x391   :  { %v816_v63 = vpop.permute.xlu1 %815 }
 0x394   :  { %v2148_v59 = vpop.eup %2147 }
 0x395   :  { %v589_v60 = vmul.f32 %v2148_v59, %v2144_v48 }
 0x397   :  { %2014 = vmatmul.mubr.msk.f32.vlgmr.msra.gmra.mrb[6].mxu1 %vm416_vm2, %v589_v60 }
 0x398   :  { %v2150_v61 = vpop.eup %2149  ;;  %2017 = vmatpush3.msra.mxu1 %v2664_v55  ;;  %2018 = vmatprep.mubr.msk.f32.mxu1 %vm2419_vm1, %v2418_v14 }
 0x399   :  { %v590_v62 = vmul.f32 %v2150_v61, %v2146_v50  ;;  %2026 = vmatprep.subr.mxu1 %v2418_v14 }
 0x39b   :  { %2019 = vmatmul.mubr.msk.f32.vlgmr.msra.gmra.mrb[8].mxu1 %vm416_vm2, %v590_v62 }
 0x39c   :  { %2028 = vmatprep.mubr.msk.f32.mxu1 %vm2419_vm1, %v2418_v14 }
 0x39f   :  { %2027 = vmatpush3.xpose.msk.msra.mxu1 %vm416_vm2, %v818_v43 }
 0x3a0   :  { %2036 = vmatprep.subr.mxu1 %v2418_v14 }
 0x3a2   :  { %2029 = vmatmul.mubr.msk.f32.vlgmr.msra.gmra.mrb[10].mxu1 %vm416_vm2, %v816_v63 }
 0x3a3   :  { %2038 = vmatprep.mubr.msk.f32.mxu1 %vm2419_vm1, %v2418_v14 }
 0x3ca   :  { %v811_v0 = vpop.f32.mrb[4].mxu0 }
 0x3cb   :  { %v2025_v1 = vpop.f32.mrb[5].mxu0  ;;  %v893_v2 = vsel %vm416_vm2, %v811_v0, -inf }
 0x3cc   :  { %894 = vmax.xlane.f32.xlu0 %v893_v2 }
 0x459   :  { %v895_v3 = vpop.xlane.xlu0 %894 }
 0x45a   :  { %v899_v4 = vsub.f32 %v811_v0, %v895_v3 }
 0x45c   :  { %v901_v5 = vmul.f32 1.442695, %v899_v4 }
 0x45e   :  { %2151 = vpow2.f32 %v901_v5 }
 0x468   :  { %v2152_v6 = vpop.eup %2151 }
 0x469   :  { %v905_v7 = vsel %vm416_vm2, %v2152_v6, 0.0 }
 0x46a   :  { %906 = vadd.xlane.f32.xlu0 %v905_v7  ;;  %v2685_v8 = vpop.f32.mrb[6].mxu1 }
 0x46b   :  { %v2015_v9 = vpop.f32.mrb[7].mxu1 }
 0x46e   :  { %v2687_v10 = vpop.f32.mrb[8].mxu1 }
 0x46f   :  { %v2020_v11 = vpop.f32.mrb[9].mxu1 }
 0x475   :  { %v889_v12 = vpop.f32.mrb[10].mxu1 }
 0x476   :  { %v2030_v13 = vpop.f32.mrb[11].mxu1  ;;  %v896_v15 = vsel %vm416_vm2, %v889_v12, -inf }
 0x477   :  { %897 = vmax.xlane.f32.xlu1 %v896_v15 }
 0x480   :  { %916 = vrot.lane.b32.xlu0 %v2666_v56, %s2420_s8 }
 0x488   :  { %993 = vrot.lane.b32.xlu1 %v2664_v55, %s2420_s8 }
 0x48c   :  { %1071 = vrot.lane.b32.xlu1 %v2623_v23, %s2421_s20 }
 0x490   :  { %1149 = vrot.lane.b32.xlu1 %v2621_v20, %s2421_s20 }
 0x494   :  { %1147 = vrot.lane.b32.xlu1 %v2640_v26, %s2421_s20 }
 0x4f7   :  { %v907_v16 = vpop.xlane.xlu0 %906 }
 0x4f8   :  { %2153 = vrcp.f32 %v907_v16 }
 0x4fb   :  { %v917_v17 = vpop.permute.xlu0 %916 }
 0x4fc   :  { %2032 = vmatpush3.msra.mxu0 %v917_v17 }
 0x4fd   :  { %2041 = vmatprep.subr.mxu0 %v2418_v14 }
 0x502   :  { %v2154_v18 = vpop.eup %2153 }
 0x503   :  { %v913_v19 = vmul.f32 %v2154_v18, %v2152_v6 }
 0x504   :  { %v898_v21 = vpop.xlane.xlu1 %897 }
 0x505   :  { %v900_v22 = vsub.f32 %v889_v12, %v898_v21  ;;  %2034 = vmatmul.mubr.msk.f32.vlgmr.msra.gmra.mrb[6].mxu0 %vm416_vm2, %v913_v19 }
 0x506   :  { %2043 = vmatprep.mubr.msk.f32.mxu0 %vm2419_vm1, %v2418_v14 }
 0x507   :  { %v903_v25 = vmul.f32 1.442695, %v900_v22 }
 0x508   :  { %v994_v27 = vpop.permute.xlu1 %993 }
 0x509   :  { %2155 = vpow2.f32 %v903_v25  ;;  %2037 = vmatpush3.msra.mxu1 %v994_v27 }
 0x50a   :  { %2046 = vmatprep.subr.mxu1 %v2418_v14 }
 0x50c   :  { %v1072_v28 = vpop.permute.xlu1 %1071 }
 0x50d   :  { %2042 = vmatpush3.xpose.msk.msra.mxu0 %vm416_vm2, %v1072_v28 }
 0x50e   :  { %2051 = vmatprep.subr.mxu0 %v2418_v14 }
 0x510   :  { %v1150_v34 = vpop.permute.xlu1 %1149 }
 0x513   :  { %v2156_v29 = vpop.eup %2155 }
 0x514   :  { %v908_v30 = vsel %vm416_vm2, %v2156_v29, 0.0  ;;  %v1148_v36 = vpop.permute.xlu1 %1147 }
 0x515   :  { %909 = vadd.xlane.f32.xlu0 %v908_v30 }
 0x52b   :  { %1069 = vrot.lane.b32.xlu0 %v2625_v24, %s2421_s20 }
 0x5a2   :  { %v910_v31 = vpop.xlane.xlu0 %909 }
 0x5a3   :  { %2157 = vrcp.f32 %v910_v31 }
 0x5a6   :  { %v1070_v32 = vpop.permute.xlu0 %1069 }
 0x5a7   :  { %2044 = vmatmul.mubr.msk.f32.vlgmr.msra.gmra.mrb[8].mxu0 %vm416_vm2, %v1070_v32 }
 0x5a8   :  { %2053 = vmatprep.mubr.msk.f32.mxu0 %vm2419_vm1, %v2418_v14 }
 0x5ad   :  { %v2158_v33 = vpop.eup %2157 }
 0x5ae   :  { %v914_v35 = vmul.f32 %v2158_v33, %v2156_v29 }
 0x5b0   :  { %2039 = vmatmul.mubr.msk.f32.vlgmr.msra.gmra.mrb[12].mxu1 %vm416_vm2, %v914_v35 }
 0x5b1   :  { %2047 = vmatpush3.xpose.msk.msra.mxu1 %vm416_vm2, %v1150_v34  ;;  %2048 = vmatprep.mubr.msk.f32.mxu1 %vm2419_vm1, %v2418_v14 }
 0x5b2   :  { %2056 = vmatprep.subr.mxu1 %v2418_v14 }
 0x5b4   :  { %2049 = vmatmul.mubr.msk.f32.vlgmr.msra.gmra.mrb[14].mxu1 %vm416_vm2, %v1148_v36  ;;  %v1761_v36 = vld [vmem:[#allocation14] sm:$0xff] }
 0x5b5   :  { %2058 = vmatprep.mubr.msk.f32.mxu1 %vm2419_vm1, %v2418_v14 }
 0x5d8   :  { %v2721_v37 = vpop.f32.mrb[6].mxu0 }
 0x5d9   :  { %v2035_v38 = vpop.f32.mrb[7].mxu0 }
 0x67a   :  { %v1143_v39 = vpop.f32.mrb[8].mxu0 }
 0x67b   :  { %v2045_v40 = vpop.f32.mrb[9].mxu0  ;;  %v1225_v41 = vsel %vm416_vm2, %v1143_v39, -inf }
 0x67c   :  { %1226 = vmax.xlane.f32.xlu0 %v1225_v41 }
 0x683   :  { %v2724_v42 = vpop.f32.mrb[12].mxu1 }
 0x684   :  { %v2040_v43 = vpop.f32.mrb[13].mxu1 }
 0x687   :  { %v1221_v44 = vpop.f32.mrb[14].mxu1 }
 0x688   :  { %v2050_v45 = vpop.f32.mrb[15].mxu1  ;;  %v1228_v46 = vsel %vm416_vm2, %v1221_v44, -inf }
 0x689   :  { %1229 = vmax.xlane.f32.xlu1 %v1228_v46 }
 0x69a   :  { %1323 = vrot.lane.b32.xlu1 %v2664_v55, %s2421_s20 }
 0x69e   :  { %1401 = vrot.lane.b32.xlu1 %v2623_v23, %s2422_s28 }
 0x6a2   :  { %1479 = vrot.lane.b32.xlu1 %v2621_v20, %s2422_s28 }
 0x6a6   :  { %1477 = vrot.lane.b32.xlu1 %v2640_v26, %s2422_s28 }
 0x709   :  { %v1227_v47 = vpop.xlane.xlu0 %1226 }
 0x70a   :  { %v1231_v48 = vsub.f32 %v1143_v39, %v1227_v47  ;;  %v1763_v39 = vld [vmem:[#allocation14 + $0x10] sm:$0xff] }
 0x70c   :  { %v1233_v49 = vmul.f32 1.442695, %v1231_v48 }
 0x70e   :  { %2159 = vpow2.f32 %v1233_v49 }
 0x716   :  { %v1230_v50 = vpop.xlane.xlu1 %1229 }
 0x717   :  { %v1232_v20 = vsub.f32 %v1221_v44, %v1230_v50 }
 0x718   :  { %v2160_v51 = vpop.eup %2159 }
 0x719   :  { %v1237_v52 = vsel %vm416_vm2, %v2160_v51, 0.0  ;;  %v1235_v23 = vmul.f32 1.442695, %v1232_v20 }
 0x71a   :  { %1238 = vadd.xlane.f32.xlu0 %v1237_v52  ;;  %v1324_v53 = vpop.permute.xlu1 %1323 }
 0x71b   :  { %2057 = vmatpush3.msra.mxu1 %v1324_v53  ;;  %2161 = vpow2.f32 %v1235_v23 }
 0x71c   :  { %2066 = vmatprep.subr.mxu1 %v2418_v14 }
 0x71e   :  { %v1402_v61 = vpop.permute.xlu1 %1401 }
 0x722   :  { %v1480_v0 = vpop.permute.xlu1 %1479 }
 0x725   :  { %v2162_v26 = vpop.eup %2161 }
 0x726   :  { %v1240_v54 = vsel %vm416_vm2, %v2162_v26, 0.0  ;;  %v1478_v2 = vpop.permute.xlu1 %1477 }
 0x730   :  { %1247 = vrot.lane.b32.xlu0 %v2666_v56, %s2421_s20 }
 0x74f   :  { %1241 = vadd.xlane.f32.xlu0 %v1240_v54  ;;  %v1909_v54 = vld [vmem:[#allocation16] ss:$0 sm:$0xff] }
 0x765   :  { %1399 = vrot.lane.b32.xlu0 %v2625_v24, %s2422_s28 }
 0x7a7   :  { %v1239_v57 = vpop.xlane.xlu0 %1238 }
 0x7a8   :  { %2163 = vrcp.f32 %v1239_v57 }
 0x7ab   :  { %v1248_v58 = vpop.permute.xlu0 %1247 }
 0x7ac   :  { %2052 = vmatpush3.msra.mxu0 %v1248_v58 }
 0x7ad   :  { %2061 = vmatprep.subr.mxu0 %v2418_v14 }
 0x7b2   :  { %v2164_v59 = vpop.eup %2163 }
 0x7b3   :  { %v1245_v60 = vmul.f32 %v2164_v59, %v2160_v51 }
 0x7b5   :  { %2054 = vmatmul.mubr.msk.f32.vlgmr.msra.gmra.mrb[10].mxu0 %vm416_vm2, %v1245_v60 }
 0x7b6   :  { %2062 = vmatpush3.xpose.msk.msra.mxu0 %vm416_vm2, %v1402_v61  ;;  %2063 = vmatprep.mubr.msk.f32.mxu0 %vm2419_vm1, %v2418_v14 }
 0x7b7   :  { %2071 = vmatprep.subr.mxu0 %v2418_v14 }
 0x7dc   :  { %v1242_v62 = vpop.xlane.xlu0 %1241 }
 0x7dd   :  { %2165 = vrcp.f32 %v1242_v62 }
 0x7e0   :  { %v1400_v24 = vpop.permute.xlu0 %1399 }
 0x7e1   :  { %2064 = vmatmul.mubr.msk.f32.vlgmr.msra.gmra.mrb[12].mxu0 %vm416_vm2, %v1400_v24 }
 0x7e2   :  { %2073 = vmatprep.mubr.msk.f32.mxu0 %vm2419_vm1, %v2418_v14 }
 0x7e7   :  { %v2166_v63 = vpop.eup %2165 }
 0x7e8   :  { %v1246_v1 = vmul.f32 %v2166_v63, %v2162_v26 }
 0x7ea   :  { %2059 = vmatmul.mubr.msk.f32.vlgmr.msra.gmra.mrb[16].mxu1 %vm416_vm2, %v1246_v1 }
 0x7eb   :  { %2067 = vmatpush3.xpose.msk.msra.mxu1 %vm416_vm2, %v1480_v0  ;;  %2068 = vmatprep.mubr.msk.f32.mxu1 %vm2419_vm1, %v2418_v14 }
 0x7ec   :  { %2076 = vmatprep.subr.mxu1 %v2418_v14 }
 0x7ee   :  { %2069 = vmatmul.mubr.msk.f32.vlgmr.msra.gmra.mrb[18].mxu1 %vm416_vm2, %v1478_v2 }
 0x7ef   :  { %2078 = vmatprep.mubr.msk.f32.mxu1 %vm2419_vm1, %v2418_v14 }
 0x888   :  { %v1319_v3 = vpop.f32.mrb[10].mxu0 }
 0x889   :  { %v2055_v4 = vpop.f32.mrb[11].mxu0 }
 0x8b4   :  { %v1473_v5 = vpop.f32.mrb[12].mxu0 }
 0x8b5   :  { %v2065_v6 = vpop.f32.mrb[13].mxu0  ;;  %v1555_v7 = vsel %vm416_vm2, %v1473_v5, -inf }
 0x8b6   :  { %1556 = vmax.xlane.f32.xlu0 %v1555_v7 }
 0x8bd   :  { %v1395_v9 = vpop.f32.mrb[16].mxu1 }
 0x8be   :  { %v2060_v11 = vpop.f32.mrb[17].mxu1 }
 0x8c1   :  { %v1551_v12 = vpop.f32.mrb[18].mxu1 }
 0x8c2   :  { %v2070_v13 = vpop.f32.mrb[19].mxu1  ;;  %v1558_v15 = vsel %vm416_vm2, %v1551_v12, -inf }
 0x8c3   :  { %1559 = vmax.xlane.f32.xlu1 %v1558_v15 }
 0x8d4   :  { %1653 = vrot.lane.b32.xlu1 %v2664_v55, %s2422_s28 }
 0x8d8   :  { %1731 = vrot.lane.b32.xlu1 %v2721_v37, %s2410_s22  ;;  %v1762_v37 = vld [vmem:[#allocation14 + $0x8] sm:$0xff] }
 0x8d9   :  { %v2116_v38 = vpack.c.bf16 %v1762_v37, %v1761_v36 }
 0x8dc   :  { %1733 = vrot.lane.b32.xlu1 %v2724_v42, %s2410_s22 }
 0x8e0   :  { %1741 = vrot.lane.b32.xlu1 %v1395_v9, %s2423_s29 }
 0x943   :  { %v1557_v14 = vpop.xlane.xlu0 %1556 }
 0x944   :  { %v1561_v16 = vsub.f32 %v1473_v5, %v1557_v14 }
 0x946   :  { %v1563_v17 = vmul.f32 1.442695, %v1561_v16 }
 0x948   :  { %2167 = vpow2.f32 %v1563_v17 }
 0x950   :  { %v1560_v18 = vpop.xlane.xlu1 %1559 }
 0x951   :  { %v1562_v19 = vsub.f32 %v1551_v12, %v1560_v18 }
 0x952   :  { %v2168_v21 = vpop.eup %2167 }
 0x953   :  { %v1565_v22 = vmul.f32 1.442695, %v1562_v19  ;;  %v1567_v25 = vsel %vm416_vm2, %v2168_v21, 0.0 }
 0x954   :  { %1568 = vadd.xlane.f32.xlu0 %v1567_v25  ;;  %v1654_v55 = vpop.permute.xlu1 %1653 }
 0x955   :  { %2169 = vpow2.f32 %v1565_v22  ;;  %2077 = vmatpush3.msra.mxu1 %v1654_v55 }
 0x958   :  { %v1732_v45 = vpop.permute.xlu1 %1731 }
 0x959   :  { %v1753_v48 = vsel %vm416_vm2, %v2685_v8, %v1732_v45 }
 0x95c   :  { %v1734_v47 = vpop.permute.xlu1 %1733 }
 0x95d   :  { %v1754_v53 = vsel %vm416_vm2, %v2687_v10, %v1734_v47 }
 0x95f   :  { %v2170_v27 = vpop.eup %2169 }
 0x960   :  { %v1570_v28 = vsel %vm416_vm2, %v2170_v27, 0.0  ;;  %v1742_v52 = vpop.permute.xlu1 %1741 }
 0x961   :  { %1571 = vadd.xlane.f32.xlu0 %v1570_v28  ;;  %v1757_v20 = vsel %vm1755_vm4, %v1754_v53, %v1742_v52 }
 0x977   :  { %1577 = vrot.lane.b32.xlu0 %v2666_v56, %s2422_s28  ;;  %v1764_v56 = vld [vmem:[#allocation14 + $0x18] sm:$0xff] }
 0x978   :  { %v2120_v40 = vpack.c.bf16 %v1764_v56, %v1763_v39 }
 0x97b   :  { %1739 = vrot.lane.b32.xlu0 %v1319_v3, %s2423_s29 }
 0x9e1   :  { %v1569_v29 = vpop.xlane.xlu0 %1568 }
 0x9e2   :  { %2171 = vrcp.f32 %v1569_v29 }
 0x9ec   :  { %v2172_v31 = vpop.eup %2171 }
 0x9ed   :  { %v1575_v32 = vmul.f32 %v2172_v31, %v2168_v21 }
 0x9ee   :  { %v1572_v30 = vpop.xlane.xlu0 %1571 }
 0x9ef   :  { %2173 = vrcp.f32 %v1572_v30 }
 0x9f2   :  { %v1578_v33 = vpop.permute.xlu0 %1577 }
 0x9f3   :  { %2072 = vmatpush3.msra.mxu0 %v1578_v33 }
 0x9f4   :  { %2074 = vmatmul.mubr.msk.f32.vlgmr.msra.gmra.mrb[14].mxu0 %vm416_vm2, %v1575_v32  ;;  %2117 = vmatprep.subr.bf16.mxu0 %v2116_v38 }
 0x9f5   :  { %2119 = vmatpush3.bf16.msra.mxu0 %v2116_v38 }
 0x9f6   :  { %2121 = vmatprep.subr.bf16.mxu0 %v2120_v40  ;;  %v1740_v46 = vpop.permute.xlu0 %1739 }
 0x9f7   :  { %v1756_v49 = vsel %vm1755_vm4, %v1753_v48, %v1740_v46 }
 0x9f9   :  { %v2174_v34 = vpop.eup %2173  ;;  %2123 = vmatpush3.bf16.msra.mxu0 %v2120_v40 }
 0x9fa   :  { %v1576_v35 = vmul.f32 %v2174_v34, %v2170_v27 }
 0x9fc   :  { %2079 = vmatmul.mubr.msk.f32.vlgmr.msra.gmra.mrb[20].mxu1 %vm416_vm2, %v1576_v35 }
 0xac7   :  { %v1649_v41 = vpop.f32.mrb[14].mxu0 }
 0xac8   :  { %1747 = vrot.lane.b32.xlu0 %v1649_v41, %s2424_s30  ;;  %v2075_v42 = vpop.f32.mrb[15].mxu0 }
 0xacf   :  { %v1725_v43 = vpop.f32.mrb[20].mxu1 }
 0xad0   :  { %1749 = vrot.lane.b32.xlu1 %v1725_v43, %s2424_s30  ;;  %v2080_v44 = vpop.f32.mrb[21].mxu1 }
 0xb3a   :  { %v1748_v50 = vpop.permute.xlu0 %1747 }
 0xb3b   :  { %v1759_v51 = vsel %vm1758_vm3, %v1756_v49, %v1748_v50 }
 0xb3c   :  { %2089 = vmatprep.mubr.msk.f32.mxu0 %vm160_vm0, %v1759_v51 }
 0xb42   :  { %v1750_v23 = vpop.permute.xlu1 %1749 }
 0xb43   :  { %v1760_v26 = vsel %vm1758_vm3, %v1757_v20, %v1750_v23 }
 0xb44   :  { %2090 = vmatmul.mubr.msk.f32.vlgmr.msra.gmra.mrb[16].mxu0 %vm160_vm0, %v1760_v26 }
 0xc17   :  { %v2091_v57 = vpop.f32.mrb[16].mxu0 }
 0xc18   :  { %v1850_v8 = vadd.f32 %v2091_v57, %v1909_v54  ;;  %v1844_v58 = vpop.f32.mrb[17].mxu0 }
 0xc19   :  { %v1845_v59 = vadd.f32 %v1909_v54, %v1844_v58 }
 0xc1a   :  { %1854 = vst.msk [vmem:[#allocation17 + $0x8] sm:$0xff] %vm160_vm0, %v1850_v8 }
 0xc1b   :  { %1853 = vst.msk [vmem:[#allocation17] sm:$0xff] %vm160_vm0, %v1845_v59 }
 0xc1c   :  { %2384 = shalt.err (!%p2381_p6)
}
 0xc1d   :  { %s2385_s5 = scalar_lea.hbm %s2805_s9, 256 }
 0xc1e   :  { %p2386_p7 = scmp.ne.s32.totalorder %s2805_s9, %s2385_s5  ;;  %p2389_p8 = scmp.lt.u32.totalorder %s2385_s5, %s2805_s9 }
 0xc20   :  { %p2391_p9 = pnand %p2389_p8, %p2386_p7 }
 0xc22   :  { %2394 = shalt.err (!%p2391_p9)
}
 0xc23   :  { %1866 = dma.vmem_to_hbm [thread:$0]  %s1861_s13, 256, %s2805_s9, [#allocation4], %s2409_s21, %s2409_s21, %s2410_s22  }
 0xc24   :  { %2405 = dma.done.wait [#allocation4], 256  }
 0xc25   :  { %2406 = vsyncadd [#allocation4], 4294967040 }
 0xc26   :  { %1870 = vsyncpa [#allocation3], 1 }
 0xc27   :  { %1871 = vsyncpa [#allocation6], 1 }
 0xc28   :  { %1872 = vsyncpa [#allocation9], 1 }
 0xc29   :  { %1873 = vsyncpa [#allocation12], 1 }
 0xc2a   :  { %1874 = vsyncpa [#allocation15], 1 }
 0xc2b   :  { %1875 = vsyncpa [#allocation4], 1 }

// kernel: tpu_custom_call.1
= control target key start
LH: loop header
LB: loop body
LE: loop exit
PB: predicated region body
PF: predicated region fallthrough
CT: control target
= control target key end

     0   :  { %14 = vsyncpa [#allocation3], 0  ;;  %s2796_s0 = inlined_call_operand.hbm [shape: f32[2,8,32], index: 0, kind: input, shape index: {}]   ;;  %s2797_s1 = inlined_call_operand.hbm [shape: f32[32,32], index: 1, kind: input, shape index: {}]   ;;  %s2798_s2 = inlined_call_operand.hbm [shape: f32[1,32], index: 2, kind: input, shape index: {}]   ;;  %s2799_s3 = inlined_call_operand.hbm [shape: f32[32,32], index: 3, kind: input, shape index: {}]   ;;  %s2800_s4 = inlined_call_operand.hbm [shape: f32[1,32], index: 4, kind: input, shape index: {}]   ;;  %s2801_s5 = inlined_call_operand.hbm [shape: f32[32,32], index: 5, kind: input, shape index: {}]   ;;  %s2802_s6 = inlined_call_operand.hbm [shape: f32[1,32], index: 6, kind: input, shape index: {}]   ;;  %s2803_s7 = inlined_call_operand.hbm [shape: f32[32,32], index: 7, kind: input, shape index: {}]   ;;  %s2804_s8 = inlined_call_operand.hbm [shape: f32[1,32], index: 8, kind: input, shape index: {}]   ;;  %s2805_s9 = inlined_call_operand.hbm [shape: f32[2,8,32], index: 9, kind: output, shape index: {}]  }
   0x1   :  { %15 = vsyncpa [#allocation6], 0 }
   0x2   :  { %16 = vsyncpa [#allocation9], 0 }
   0x3   :  { %17 = vsyncpa [#allocation12], 0 }
   0x4   :  { %18 = vsyncpa [#allocation15], 0 }
   0x5   :  { %19 = vsyncpa [#allocation4], 0  ;;  %s2407_s30 = smov [#allocation5]   ;;  %s2408_s11 = smov [#allocation8]  }
   0x6   :  { %s37_s10 = sshll.u32 %s2407_s30, 4  ;;  %s59_s12 = sshll.u32 %s2408_s11, 4  ;;  %s38_s10 = int_to_ptr.vmem [resolvable:$true] %s37_s10  ;;  %s2476_s12 = int_to_ptr.vmem [resolvable:$true] %s59_s12 }
   0x7   :  { %s2175_s15 = scalar_lea.hbm %s2797_s1, 512 }
   0x8   :  { %p2176_p0 = scmp.ne.s32.totalorder %s2797_s1, %s2175_s15  ;;  %p2179_p1 = scmp.lt.u32.totalorder %s2175_s15, %s2797_s1 }
   0xa   :  { %p2181_p2 = pnand %p2179_p1, %p2176_p0 }
   0xc   :  { %2184 = shalt.err (!%p2181_p2)
}
   0xd   :  { %s2185_s20 = scalar_lea.vmem %s38_s10, 512  ;;  %p2190_p4 = scmp.lt.s32.totalorder %s38_s10, %s38_s10 }
   0xe   :  { %p2186_p3 = scmp.ne.s32.totalorder %s38_s10, %s2185_s20  ;;  %p2191_p5 = scmp.lt.s32.totalorder %s2185_s20, %s2185_s20 }
  0x10   :  { %p2192_p6 = por %p2191_p5, %p2190_p4 }
  0x12   :  { %p2193_p7 = pnand %p2192_p6, %p2186_p3 }
  0x14   :  { %2196 = shalt.err (!%p2193_p7)
}
  0x15   :  { %s2409_s21 = smov 128   ;;  %s2410_s22 = smov 8  }
  0x16   :  { %43 = dma.hbm_to_vmem [thread:$0]  %s2797_s1, 512, %s38_s10, [#allocation6], %s2409_s21, %s2409_s21, %s2410_s22  }
  0x17   :  { %s2197_s27 = scalar_lea.hbm %s2799_s3, 512 }
  0x18   :  { %p2198_p8 = scmp.ne.s32.totalorder %s2799_s3, %s2197_s27  ;;  %p2201_p9 = scmp.lt.u32.totalorder %s2197_s27, %s2799_s3 }
  0x1a   :  { %p2203_p10 = pnand %p2201_p9, %p2198_p8 }
  0x1c   :  { %2206 = shalt.err (!%p2203_p10)
}
  0x1d   :  { %s2207_s13 = scalar_lea.vmem %s2476_s12, 512  ;;  %p2212_p12 = scmp.lt.s32.totalorder %s2476_s12, %s2476_s12 }
  0x1e   :  { %p2208_p11 = scmp.ne.s32.totalorder %s2476_s12, %s2207_s13  ;;  %p2213_p13 = scmp.lt.s32.totalorder %s2207_s13, %s2207_s13 }
  0x20   :  { %p2214_p0 = por %p2213_p13, %p2212_p12 }
  0x22   :  { %p2215_p1 = pnand %p2214_p0, %p2208_p11 }
  0x24   :  { %2218 = shalt.err (!%p2215_p1)
}
  0x25   :  { %65 = dma.hbm_to_vmem [thread:$0]  %s2799_s3, 512, %s2476_s12, [#allocation9], %s2409_s21, %s2409_s21, %s2410_s22  }
  0x26   :  { %s2411_s14 = smov [#allocation11]   ;;  %s2412_s16 = smov [#allocation14]  }
  0x27   :  { %s81_s15 = sshll.u32 %s2411_s14, 4  ;;  %s103_s17 = sshll.u32 %s2412_s16, 4  ;;  %s82_s15 = int_to_ptr.vmem [resolvable:$true] %s81_s15  ;;  %s2513_s17 = int_to_ptr.vmem [resolvable:$true] %s103_s17 }
  0x28   :  { %s2219_s20 = scalar_lea.hbm %s2801_s5, 512 }
  0x29   :  { %p2220_p2 = scmp.ne.s32.totalorder %s2801_s5, %s2219_s20  ;;  %p2223_p3 = scmp.lt.u32.totalorder %s2219_s20, %s2801_s5 }
  0x2b   :  { %p2225_p4 = pnand %p2223_p3, %p2220_p2 }
  0x2d   :  { %2228 = shalt.err (!%p2225_p4)
}
  0x2e   :  { %s2229_s3 = scalar_lea.vmem %s82_s15, 512  ;;  %p2234_p6 = scmp.lt.s32.totalorder %s82_s15, %s82_s15 }
  0x2f   :  { %p2230_p5 = scmp.ne.s32.totalorder %s82_s15, %s2229_s3  ;;  %p2235_p7 = scmp.lt.s32.totalorder %s2229_s3, %s2229_s3 }
  0x31   :  { %p2236_p8 = por %p2235_p7, %p2234_p6 }
  0x33   :  { %p2237_p9 = pnand %p2236_p8, %p2230_p5 }
  0x35   :  { %2240 = shalt.err (!%p2237_p9)
}
  0x36   :  { %87 = dma.hbm_to_vmem [thread:$0]  %s2801_s5, 512, %s82_s15, [#allocation12], %s2409_s21, %s2409_s21, %s2410_s22  }
  0x37   :  { %s2241_s30 = scalar_lea.hbm %s2803_s7, 512 }
  0x38   :  { %p2242_p10 = scmp.ne.s32.totalorder %s2803_s7, %s2241_s30  ;;  %p2245_p11 = scmp.lt.u32.totalorder %s2241_s30, %s2803_s7 }
  0x3a   :  { %p2247_p12 = pnand %p2245_p11, %p2242_p10 }
  0x3c   :  { %2250 = shalt.err (!%p2247_p12)
}
  0x3d   :  { %s2251_s14 = scalar_lea.vmem %s2513_s17, 512  ;;  %p2256_p0 = scmp.lt.s32.totalorder %s2513_s17, %s2513_s17 }
  0x3e   :  { %p2252_p13 = scmp.ne.s32.totalorder %s2513_s17, %s2251_s14  ;;  %p2257_p1 = scmp.lt.s32.totalorder %s2251_s14, %s2251_s14 }
  0x40   :  { %p2258_p2 = por %p2257_p1, %p2256_p0 }
  0x42   :  { %p2259_p3 = pnand %p2258_p2, %p2252_p13 }
  0x44   :  { %2262 = shalt.err (!%p2259_p3)
}
  0x45   :  { %109 = dma.hbm_to_vmem [thread:$0]  %s2803_s7, 512, %s2513_s17, [#allocation15], %s2409_s21, %s2409_s21, %s2410_s22  }
  0x46   :  { %s2413_s16 = smov [#allocation2]   ;;  %s2414_s19 = smov [#allocation7]  }
  0x47   :  { %s25_s18 = sshll.u32 %s2413_s16, 4  ;;  %s50_s20 = sshll.u32 %s2414_s19, 4  ;;  %s26_s18 = int_to_ptr.vmem [resolvable:$true] %s25_s18  ;;  %s51_s20 = int_to_ptr.vmem [resolvable:$true] %s50_s20 }
  0x48   :  { %s2263_s25 = scalar_lea.hbm %s2796_s0, 256 }
  0x49   :  { %p2264_p4 = scmp.ne.s32.totalorder %s2796_s0, %s2263_s25  ;;  %p2267_p5 = scmp.lt.u32.totalorder %s2263_s25, %s2796_s0 }
  0x4b   :  { %p2269_p6 = pnand %p2267_p5, %p2264_p4 }
  0x4d   :  { %2272 = shalt.err (!%p2269_p6)
}
  0x4e   :  { %s2273_s7 = scalar_lea.vmem %s26_s18, 256  ;;  %p2278_p8 = scmp.lt.s32.totalorder %s26_s18, %s26_s18 }
  0x4f   :  { %p2274_p7 = scmp.ne.s32.totalorder %s26_s18, %s2273_s7  ;;  %p2279_p9 = scmp.lt.s32.totalorder %s2273_s7, %s2273_s7 }
  0x51   :  { %p2280_p10 = por %p2279_p9, %p2278_p8 }
  0x53   :  { %p2281_p11 = pnand %p2280_p10, %p2274_p7 }
  0x55   :  { %2284 = shalt.err (!%p2281_p11)
}
  0x56   :  { %31 = dma.hbm_to_vmem [thread:$0]  %s2796_s0, 256, %s26_s18, [#allocation3], %s2409_s21, %s2409_s21, %s2410_s22  }
  0x57   :  { %s2285_s11 = scalar_lea.hbm %s2798_s2, 16 }
  0x58   :  { %p2286_p12 = scmp.ne.s32.totalorder %s2798_s2, %s2285_s11  ;;  %p2289_p13 = scmp.lt.u32.totalorder %s2285_s11, %s2798_s2 }
  0x5a   :  { %p2291_p0 = pnand %p2289_p13, %p2286_p12 }
  0x5c   :  { %2294 = shalt.err (!%p2291_p0)
}
  0x5d   :  { %s2295_s5 = scalar_lea.vmem %s51_s20, 16  ;;  %s2299_s15 = scalar_lea.vmem %s51_s20, 32 }
  0x5e   :  { %p2296_p1 = scmp.ne.s32.totalorder %s51_s20, %s2295_s5  ;;  %p2300_p2 = scmp.lt.s32.totalorder %s51_s20, %s51_s20 }
  0x5f   :  { %p2301_p3 = scmp.lt.s32.totalorder %s2299_s15, %s2295_s5 }
  0x61   :  { %p2302_p4 = por %p2301_p3, %p2300_p2 }
  0x63   :  { %p2303_p5 = pnand %p2302_p4, %p2296_p1 }
  0x65   :  { %2306 = shalt.err (!%p2303_p5)
}
  0x66   :  { %53 = dma.hbm_to_vmem [thread:$0]  %s2798_s2, 16, %s51_s20, [#allocation6]  }
  0x67   :  { %s2415_s18 = smov [#allocation10]   ;;  %s2416_s23 = smov [#allocation13]  }
  0x68   :  { %s72_s19 = sshll.u32 %s2415_s18, 4  ;;  %s94_s24 = sshll.u32 %s2416_s23, 4  ;;  %s73_s19 = int_to_ptr.vmem [resolvable:$true] %s72_s19  ;;  %s95_s24 = int_to_ptr.vmem [resolvable:$true] %s94_s24 }
  0x69   :  { %s2307_s3 = scalar_lea.hbm %s2800_s4, 16 }
  0x6a   :  { %p2308_p6 = scmp.ne.s32.totalorder %s2800_s4, %s2307_s3  ;;  %p2311_p7 = scmp.lt.u32.totalorder %s2307_s3, %s2800_s4 }
  0x6c   :  { %p2313_p8 = pnand %p2311_p7, %p2308_p6 }
  0x6e   :  { %2316 = shalt.err (!%p2313_p8)
}
  0x6f   :  { %s2317_s2 = scalar_lea.vmem %s73_s19, 16  ;;  %s2321_s20 = scalar_lea.vmem %s73_s19, 32 }
  0x70   :  { %p2318_p9 = scmp.ne.s32.totalorder %s73_s19, %s2317_s2  ;;  %p2322_p10 = scmp.lt.s32.totalorder %s73_s19, %s73_s19 }
  0x71   :  { %p2323_p11 = scmp.lt.s32.totalorder %s2321_s20, %s2317_s2 }
  0x73   :  { %p2324_p12 = por %p2323_p11, %p2322_p10 }
  0x75   :  { %p2325_p13 = pnand %p2324_p12, %p2318_p9 }
  0x77   :  { %2328 = shalt.err (!%p2325_p13)
}
  0x78   :  { %75 = dma.hbm_to_vmem [thread:$0]  %s2800_s4, 16, %s73_s19, [#allocation9]  }
  0x79   :  { %s2329_s13 = scalar_lea.hbm %s2802_s6, 16 }
  0x7a   :  { %p2330_p0 = scmp.ne.s32.totalorder %s2802_s6, %s2329_s13  ;;  %p2333_p1 = scmp.lt.u32.totalorder %s2329_s13, %s2802_s6 }
  0x7c   :  { %p2335_p2 = pnand %p2333_p1, %p2330_p0 }
  0x7e   :  { %2338 = shalt.err (!%p2335_p2)
}
  0x7f   :  { %s2339_s15 = scalar_lea.vmem %s95_s24, 16  ;;  %s2343_s0 = scalar_lea.vmem %s95_s24, 32 }
  0x80   :  { %p2340_p3 = scmp.ne.s32.totalorder %s95_s24, %s2339_s15  ;;  %p2344_p4 = scmp.lt.s32.totalorder %s95_s24, %s95_s24 }
  0x81   :  { %p2345_p5 = scmp.lt.s32.totalorder %s2343_s0, %s2339_s15 }
  0x83   :  { %p2346_p6 = por %p2345_p5, %p2344_p4 }
  0x85   :  { %p2347_p7 = pnand %p2346_p6, %p2340_p3 }
  0x87   :  { %2350 = shalt.err (!%p2347_p7)
}
  0x88   :  { %97 = dma.hbm_to_vmem [thread:$0]  %s2802_s6, 16, %s95_s24, [#allocation12]  }
  0x89   :  { %s2417_s18 = smov [#allocation16]   ;;  %s2351_s26 = scalar_lea.hbm %s2804_s8, 16 }
  0x8a   :  { %s116_s19 = sshll.u32 %s2417_s18, 4  ;;  %p2352_p8 = scmp.ne.s32.totalorder %s2804_s8, %s2351_s26  ;;  %s117_s19 = int_to_ptr.vmem [resolvable:$true] %s116_s19 }
  0x8b   :  { %p2355_p9 = scmp.lt.u32.totalorder %s2351_s26, %s2804_s8 }
  0x8d   :  { %p2357_p10 = pnand %p2355_p9, %p2352_p8 }
  0x8f   :  { %2360 = shalt.err (!%p2357_p10)
}
  0x90   :  { %s2361_s17 = scalar_lea.vmem %s117_s19, 16  ;;  %s2365_s6 = scalar_lea.vmem %s117_s19, 32 }
  0x91   :  { %p2362_p11 = scmp.ne.s32.totalorder %s117_s19, %s2361_s17  ;;  %p2366_p12 = scmp.lt.s32.totalorder %s117_s19, %s117_s19 }
  0x92   :  { %p2367_p13 = scmp.lt.s32.totalorder %s2365_s6, %s2361_s17 }
  0x94   :  { %p2368_p0 = por %p2367_p13, %p2366_p12 }
  0x96   :  { %p2369_p1 = pnand %p2368_p0, %p2362_p11 }
  0x98   :  { %2372 = shalt.err (!%p2369_p1)
}
  0x99   :  { %119 = dma.hbm_to_vmem [thread:$0]  %s2804_s8, 16, %s117_s19, [#allocation15]  }
  0x9a   :  { %2395 = dma.done.wait [#allocation3], 256  }
  0x9b   :  { %2396 = vsyncadd [#allocation3], 4294967040 }
  0x9c   :  { %2397 = dma.done.wait [#allocation6], 528  }
  0x9d   :  { %2398 = vsyncadd [#allocation6], 4294966768 }
  0x9e   :  { %2399 = dma.done.wait [#allocation9], 528  }
  0x9f   :  { %2400 = vsyncadd [#allocation9], 4294966768 }
  0xa0   :  { %2401 = dma.done.wait [#allocation12], 528  }
  0xa1   :  { %2402 = vsyncadd [#allocation12], 4294966768 }
  0xa2   :  { %2403 = dma.done.wait [#allocation15], 528  }
  0xa3   :  { %2404 = vsyncadd [#allocation15], 4294966768  ;;  %v149_v0 = vld [vmem:[#allocation5] sm:$0xff]  ;;  %v150_v1 = vld [vmem:[#allocation5 + $0x8] sm:$0xff]  ;;  %vm160_vm0 = vcmask 261120   ;;  %v2418_v14 = vmov 0.0  }
  0xa4   :  { %v242_v2 = vld [vmem:[#allocation8] sm:$0xff]  ;;  %v2092_v3 = vpack.c.bf16 %v150_v1, %v149_v0  ;;  %v243_v4 = vld [vmem:[#allocation8 + $0x8] sm:$0xff]  ;;  %v152_v6 = vld [vmem:[#allocation5 + $0x18] sm:$0xff]  ;;  %vm2419_vm1 = vmmov 0   ;;  %vm416_vm2 = vcmask 64512   ;;  %s2420_s8 = smov 120  }
  0xa5   :  { %v151_v5 = vld [vmem:[#allocation5 + $0x10] sm:$0xff]  ;;  %v2100_v7 = vpack.c.bf16 %v243_v4, %v242_v2  ;;  %v245_v10 = vld [vmem:[#allocation8 + $0x18] sm:$0xff]  ;;  %v1879_v16 = vld [vmem:[#allocation10] ss:$0 sm:$0xff]  ;;  %s2421_s20 = smov 112   ;;  %s2422_s28 = smov 104  }
  0xa6   :  { %v2096_v8 = vpack.c.bf16 %v152_v6, %v151_v5  ;;  %v244_v9 = vld [vmem:[#allocation8 + $0x10] sm:$0xff]  ;;  %2093 = vmatprep.subr.bf16.mxu0 %v2092_v3  ;;  %v1876_v15 = vld [vmem:[#allocation7] ss:$0 sm:$0xff]  ;;  %v328_v27 = vld [vmem:[#allocation11] sm:$0xff]  ;;  %s2423_s29 = smov 16   ;;  %s2424_s30 = smov 24  }
  0xa7   :  { %v147_v11 = vld [vmem:[#allocation2] sm:$0xff]  ;;  %v2104_v12 = vpack.c.bf16 %v245_v10, %v244_v9  ;;  %2101 = vmatprep.subr.bf16.mxu1 %v2100_v7  ;;  %2095 = vmatpush3.bf16.msra.mxu0 %v2092_v3  ;;  %v148_v13 = vld [vmem:[#allocation2 + $0x8] sm:$0xff]  ;;  %v1882_v53 = vld [vmem:[#allocation13] ss:$0 sm:$0xff]  ;;  %vm1758_vm3 = vcmask 195584   ;;  %vm1755_vm4 = vcmask 130048  }
  0xa8   :  { %1976 = vmatprep.mubr.msk.f32.mxu0 %vm160_vm0, %v147_v11  ;;  %2103 = vmatpush3.bf16.msra.mxu1 %v2100_v7  ;;  %v329_v28 = vld [vmem:[#allocation11 + $0x8] sm:$0xff]  ;;  %v330_v29 = vld [vmem:[#allocation11 + $0x10] sm:$0xff]  ;;  %v331_v31 = vld [vmem:[#allocation11 + $0x18] sm:$0xff]  ;;  %s2425_s11 = smov [#allocation17]  }
  0xa9   :  { %2097 = vmatprep.subr.bf16.mxu0 %v2096_v8  ;;  %2105 = vmatprep.subr.bf16.mxu1 %v2104_v12  ;;  %v2108_v30 = vpack.c.bf16 %v329_v28, %v328_v27  ;;  %v2112_v32 = vpack.c.bf16 %v331_v31, %v330_v29  ;;  %s1860_s13 = sshll.u32 %s2425_s11, 4  ;;  %s1861_s13 = int_to_ptr.vmem [resolvable:$true] %s1860_s13 }
  0xaa   :  { %1987 = vmatprep.mubr.msk.f32.mxu1 %vm160_vm0, %v147_v11  ;;  %s2373_s1 = scalar_lea.vmem %s1861_s13, 256  ;;  %p2378_p3 = scmp.lt.s32.totalorder %s1861_s13, %s1861_s13 }
  0xab   :  { %2099 = vmatpush3.bf16.msra.mxu0 %v2096_v8  ;;  %p2374_p2 = scmp.ne.s32.totalorder %s1861_s13, %s2373_s1  ;;  %p2379_p4 = scmp.lt.s32.totalorder %s2373_s1, %s2373_s1 }
  0xac   :  { %2107 = vmatpush3.bf16.msra.mxu1 %v2104_v12  ;;  %2109 = vmatprep.subr.bf16.mxu0 %v2108_v30 }
  0xad   :  { %2001 = vmatprep.subr.mxu1 %v2418_v14  ;;  %p2380_p5 = por %p2379_p4, %p2378_p3 }
  0xae   :  { %1977 = vmatmul.mubr.msk.f32.vlgmr.msra.gmra.mrb[0].mxu0 %vm160_vm0, %v148_v13 }
  0xaf   :  { %1988 = vmatmul.mubr.msk.f32.vlgmr.msra.gmra.mrb[0].mxu1 %vm160_vm0, %v148_v13  ;;  %1998 = vmatprep.mubr.msk.f32.mxu0 %vm160_vm0, %v147_v11  ;;  %p2381_p6 = pnand %p2380_p5, %p2374_p2 }
  0xb0   :  { %2003 = vmatprep.mubr.msk.f32.mxu1 %vm2419_vm1, %v2418_v14  ;;  %2111 = vmatpush3.bf16.msra.mxu0 %v2108_v30 }
  0xb1   :  { %2113 = vmatprep.subr.bf16.mxu0 %v2112_v32 }
  0xb4   :  { %2115 = vmatpush3.bf16.msra.mxu0 %v2112_v32 }
  0xb5   :  { %2021 = vmatprep.subr.mxu0 %v2418_v14 }
  0xb7   :  { %1999 = vmatmul.mubr.msk.f32.vlgmr.msra.gmra.mrb[2].mxu0 %vm160_vm0, %v148_v13 }
  0xb8   :  { %2023 = vmatprep.mubr.msk.f32.mxu0 %vm2419_vm1, %v2418_v14 }
 0x181   :  { %v1978_v17 = vpop.f32.mrb[0].mxu0 }
 0x182   :  { %v1989_v18 = vpop.f32.mrb[0].mxu1  ;;  %v233_v19 = vpop.f32.mrb[1].mxu0  ;;  %v239_v25 = vadd.f32 %v1978_v17, %v1876_v15 }
 0x183   :  { %v2621_v20 = vadd.f32 %v1989_v18, %v1879_v16  ;;  %v234_v21 = vadd.f32 %v1876_v15, %v233_v19  ;;  %v319_v22 = vpop.f32.mrb[1].mxu1 }
 0x184   :  { %v2623_v23 = vadd.f32 %v1879_v16, %v319_v22  ;;  %v2640_v26 = vmul.f32 0.35355338, %v239_v25 }
 0x185   :  { %v2625_v24 = vmul.f32 0.35355338, %v234_v21  ;;  %817 = vrot.lane.b32.xlu1 %v2621_v20, %s2420_s8 }
 0x186   :  { %2002 = vmatpush3.xpose.msk.msra.mxu1 %vm416_vm2, %v2623_v23 }
 0x187   :  { %2006 = vmatprep.subr.mxu1 %v2418_v14 }
 0x189   :  { %737 = vrot.lane.b32.xlu1 %v2625_v24, %s2420_s8  ;;  %2004 = vmatmul.mubr.msk.f32.vlgmr.msra.gmra.mrb[2].mxu1 %vm416_vm2, %v2625_v24 }
 0x18a   :  { %2007 = vmatpush3.xpose.msk.msra.mxu1 %vm416_vm2, %v2621_v20  ;;  %2008 = vmatprep.mubr.msk.f32.mxu1 %vm2419_vm1, %v2418_v14  ;;  %v2000_v52 = vpop.f32.mrb[2].mxu0 }
 0x18b   :  { %2011 = vmatprep.subr.mxu1 %v2418_v14  ;;  %v405_v54 = vpop.f32.mrb[3].mxu0  ;;  %v2664_v55 = vadd.f32 %v2000_v52, %v1882_v53 }
 0x18c   :  { %v2666_v56 = vadd.f32 %v1882_v53, %v405_v54 }
 0x18d   :  { %2009 = vmatmul.mubr.msk.f32.vlgmr.msra.gmra.mrb[4].mxu1 %vm416_vm2, %v2640_v26 }
 0x18e   :  { %2013 = vmatprep.mubr.msk.f32.mxu1 %vm2419_vm1, %v2418_v14  ;;  %2012 = vmatpush3.msra.mxu1 %v2666_v56 }
 0x18f   :  { %2016 = vmatprep.subr.mxu1 %v2418_v14 }
 0x1f7   :  { %v818_v43 = vpop.permute.xlu1 %817 }
 0x1fb   :  { %v738_v47 = vpop.permute.xlu1 %737 }
 0x25c   :  { %v489_v33 = vpop.f32.mrb[2].mxu1 }
 0x25d   :  { %v2005_v34 = vpop.f32.mrb[3].mxu1  ;;  %v569_v35 = vsel %vm416_vm2, %v489_v33, -inf }
 0x25e   :  { %570 = vmax.xlane.f32.xlu0 %v569_v35 }
 0x260   :  { %v565_v36 = vpop.f32.mrb[4].mxu1 }
 0x261   :  { %v2010_v37 = vpop.f32.mrb[5].mxu1  ;;  %v572_v38 = vsel %vm416_vm2, %v565_v36, -inf }
 0x262   :  { %573 = vmax.xlane.f32.xlu0 %v572_v38 }
 0x278   :  { %739 = vrot.lane.b32.xlu0 %v2623_v23, %s2420_s8 }
 0x2eb   :  { %v571_v39 = vpop.xlane.xlu0 %570 }
 0x2ec   :  { %v575_v40 = vsub.f32 %v489_v33, %v571_v39 }
 0x2ee   :  { %v577_v41 = vmul.f32 1.442695, %v575_v40 }
 0x2ef   :  { %v574_v42 = vpop.xlane.xlu0 %573 }
 0x2f0   :  { %2143 = vpow2.f32 %v577_v41  ;;  %v576_v44 = vsub.f32 %v565_v36, %v574_v42 }
 0x2f2   :  { %v579_v45 = vmul.f32 1.442695, %v576_v44 }
 0x2f3   :  { %v740_v46 = vpop.permute.xlu0 %739 }
 0x2f4   :  { %2145 = vpow2.f32 %v579_v45  ;;  %2022 = vmatpush3.xpose.msk.msra.mxu0 %vm416_vm2, %v740_v46 }
 0x2f5   :  { %2031 = vmatprep.subr.mxu0 %v2418_v14 }
 0x2f7   :  { %2024 = vmatmul.mubr.msk.f32.vlgmr.msra.gmra.mrb[4].mxu0 %vm416_vm2, %v738_v47 }
 0x2f8   :  { %2033 = vmatprep.mubr.msk.f32.mxu0 %vm2419_vm1, %v2418_v14 }
 0x2fa   :  { %v2144_v48 = vpop.eup %2143 }
 0x2fb   :  { %v581_v49 = vsel %vm416_vm2, %v2144_v48, 0.0 }
 0x2fc   :  { %582 = vadd.xlane.f32.xlu1 %v581_v49 }
 0x2fe   :  { %v2146_v50 = vpop.eup %2145 }
 0x2ff   :  { %v584_v51 = vsel %vm416_vm2, %v2146_v50, 0.0 }
 0x300   :  { %585 = vadd.xlane.f32.xlu1 %v584_v51 }
 0x311   :  { %815 = vrot.lane.b32.xlu1 %v2640_v26, %s2420_s8 }
 0x389   :  { %v583_v57 = vpop.xlane.xlu1 %582 }
 0x38a   :  { %2147 = vrcp.f32 %v583_v57 }
 0x38d   :  { %v586_v58 = vpop.xlane.xlu1 %585 }
 0x38e   :  { %2149 = vrcp.f32 %v586_v58 }
 0x391   :  { %v816_v63 = vpop.permute.xlu1 %815 }
 0x394   :  { %v2148_v59 = vpop.eup %2147 }
 0x395   :  { %v589_v60 = vmul.f32 %v2148_v59, %v2144_v48 }
 0x397   :  { %2014 = vmatmul.mubr.msk.f32.vlgmr.msra.gmra.mrb[6].mxu1 %vm416_vm2, %v589_v60 }
 0x398   :  { %v2150_v61 = vpop.eup %2149  ;;  %2017 = vmatpush3.msra.mxu1 %v2664_v55  ;;  %2018 = vmatprep.mubr.msk.f32.mxu1 %vm2419_vm1, %v2418_v14 }
 0x399   :  { %v590_v62 = vmul.f32 %v2150_v61, %v2146_v50  ;;  %2026 = vmatprep.subr.mxu1 %v2418_v14 }
 0x39b   :  { %2019 = vmatmul.mubr.msk.f32.vlgmr.msra.gmra.mrb[8].mxu1 %vm416_vm2, %v590_v62 }
 0x39c   :  { %2028 = vmatprep.mubr.msk.f32.mxu1 %vm2419_vm1, %v2418_v14 }
 0x39f   :  { %2027 = vmatpush3.xpose.msk.msra.mxu1 %vm416_vm2, %v818_v43 }
 0x3a0   :  { %2036 = vmatprep.subr.mxu1 %v2418_v14 }
 0x3a2   :  { %2029 = vmatmul.mubr.msk.f32.vlgmr.msra.gmra.mrb[10].mxu1 %vm416_vm2, %v816_v63 }
 0x3a3   :  { %2038 = vmatprep.mubr.msk.f32.mxu1 %vm2419_vm1, %v2418_v14 }
 0x3ca   :  { %v811_v0 = vpop.f32.mrb[4].mxu0 }
 0x3cb   :  { %v2025_v1 = vpop.f32.mrb[5].mxu0  ;;  %v893_v2 = vsel %vm416_vm2, %v811_v0, -inf }
 0x3cc   :  { %894 = vmax.xlane.f32.xlu0 %v893_v2 }
 0x459   :  { %v895_v3 = vpop.xlane.xlu0 %894 }
 0x45a   :  { %v899_v4 = vsub.f32 %v811_v0, %v895_v3 }
 0x45c   :  { %v901_v5 = vmul.f32 1.442695, %v899_v4 }
 0x45e   :  { %2151 = vpow2.f32 %v901_v5 }
 0x468   :  { %v2152_v6 = vpop.eup %2151 }
 0x469   :  { %v905_v7 = vsel %vm416_vm2, %v2152_v6, 0.0 }
 0x46a   :  { %906 = vadd.xlane.f32.xlu0 %v905_v7  ;;  %v2685_v8 = vpop.f32.mrb[6].mxu1 }
 0x46b   :  { %v2015_v9 = vpop.f32.mrb[7].mxu1 }
 0x46e   :  { %v2687_v10 = vpop.f32.mrb[8].mxu1 }
 0x46f   :  { %v2020_v11 = vpop.f32.mrb[9].mxu1 }
 0x475   :  { %v889_v12 = vpop.f32.mrb[10].mxu1 }
 0x476   :  { %v2030_v13 = vpop.f32.mrb[11].mxu1  ;;  %v896_v15 = vsel %vm416_vm2, %v889_v12, -inf }
 0x477   :  { %897 = vmax.xlane.f32.xlu1 %v896_v15 }
 0x480   :  { %916 = vrot.lane.b32.xlu0 %v2666_v56, %s2420_s8 }
 0x488   :  { %993 = vrot.lane.b32.xlu1 %v2664_v55, %s2420_s8 }
 0x48c   :  { %1071 = vrot.lane.b32.xlu1 %v2623_v23, %s2421_s20 }
 0x490   :  { %1149 = vrot.lane.b32.xlu1 %v2621_v20, %s2421_s20 }
 0x494   :  { %1147 = vrot.lane.b32.xlu1 %v2640_v26, %s2421_s20 }
 0x4f7   :  { %v907_v16 = vpop.xlane.xlu0 %906 }
 0x4f8   :  { %2153 = vrcp.f32 %v907_v16 }
 0x4fb   :  { %v917_v17 = vpop.permute.xlu0 %916 }
 0x4fc   :  { %2032 = vmatpush3.msra.mxu0 %v917_v17 }
 0x4fd   :  { %2041 = vmatprep.subr.mxu0 %v2418_v14 }
 0x502   :  { %v2154_v18 = vpop.eup %2153 }
 0x503   :  { %v913_v19 = vmul.f32 %v2154_v18, %v2152_v6 }
 0x504   :  { %v898_v21 = vpop.xlane.xlu1 %897 }
 0x505   :  { %v900_v22 = vsub.f32 %v889_v12, %v898_v21  ;;  %2034 = vmatmul.mubr.msk.f32.vlgmr.msra.gmra.mrb[6].mxu0 %vm416_vm2, %v913_v19 }
 0x506   :  { %2043 = vmatprep.mubr.msk.f32.mxu0 %vm2419_vm1, %v2418_v14 }
 0x507   :  { %v903_v25 = vmul.f32 1.442695, %v900_v22 }
 0x508   :  { %v994_v27 = vpop.permute.xlu1 %993 }
 0x509   :  { %2155 = vpow2.f32 %v903_v25  ;;  %2037 = vmatpush3.msra.mxu1 %v994_v27 }
 0x50a   :  { %2046 = vmatprep.subr.mxu1 %v2418_v14 }
 0x50c   :  { %v1072_v28 = vpop.permute.xlu1 %1071 }
 0x50d   :  { %2042 = vmatpush3.xpose.msk.msra.mxu0 %vm416_vm2, %v1072_v28 }
 0x50e   :  { %2051 = vmatprep.subr.mxu0 %v2418_v14 }
 0x510   :  { %v1150_v34 = vpop.permute.xlu1 %1149 }
 0x513   :  { %v2156_v29 = vpop.eup %2155 }
 0x514   :  { %v908_v30 = vsel %vm416_vm2, %v2156_v29, 0.0  ;;  %v1148_v36 = vpop.permute.xlu1 %1147 }
 0x515   :  { %909 = vadd.xlane.f32.xlu0 %v908_v30 }
 0x52b   :  { %1069 = vrot.lane.b32.xlu0 %v2625_v24, %s2421_s20 }
 0x5a2   :  { %v910_v31 = vpop.xlane.xlu0 %909 }
 0x5a3   :  { %2157 = vrcp.f32 %v910_v31 }
 0x5a6   :  { %v1070_v32 = vpop.permute.xlu0 %1069 }
 0x5a7   :  { %2044 = vmatmul.mubr.msk.f32.vlgmr.msra.gmra.mrb[8].mxu0 %vm416_vm2, %v1070_v32 }
 0x5a8   :  { %2053 = vmatprep.mubr.msk.f32.mxu0 %vm2419_vm1, %v2418_v14 }
 0x5ad   :  { %v2158_v33 = vpop.eup %2157 }
 0x5ae   :  { %v914_v35 = vmul.f32 %v2158_v33, %v2156_v29 }
 0x5b0   :  { %2039 = vmatmul.mubr.msk.f32.vlgmr.msra.gmra.mrb[12].mxu1 %vm416_vm2, %v914_v35 }
 0x5b1   :  { %2047 = vmatpush3.xpose.msk.msra.mxu1 %vm416_vm2, %v1150_v34  ;;  %2048 = vmatprep.mubr.msk.f32.mxu1 %vm2419_vm1, %v2418_v14 }
 0x5b2   :  { %2056 = vmatprep.subr.mxu1 %v2418_v14 }
 0x5b4   :  { %2049 = vmatmul.mubr.msk.f32.vlgmr.msra.gmra.mrb[14].mxu1 %vm416_vm2, %v1148_v36  ;;  %v1761_v36 = vld [vmem:[#allocation14] sm:$0xff] }
 0x5b5   :  { %2058 = vmatprep.mubr.msk.f32.mxu1 %vm2419_vm1, %v2418_v14 }
 0x5d8   :  { %v2721_v37 = vpop.f32.mrb[6].mxu0 }
 0x5d9   :  { %v2035_v38 = vpop.f32.mrb[7].mxu0 }
 0x67a   :  { %v1143_v39 = vpop.f32.mrb[8].mxu0 }
 0x67b   :  { %v2045_v40 = vpop.f32.mrb[9].mxu0  ;;  %v1225_v41 = vsel %vm416_vm2, %v1143_v39, -inf }
 0x67c   :  { %1226 = vmax.xlane.f32.xlu0 %v1225_v41 }
 0x683   :  { %v2724_v42 = vpop.f32.mrb[12].mxu1 }
 0x684   :  { %v2040_v43 = vpop.f32.mrb[13].mxu1 }
 0x687   :  { %v1221_v44 = vpop.f32.mrb[14].mxu1 }
 0x688   :  { %v2050_v45 = vpop.f32.mrb[15].mxu1  ;;  %v1228_v46 = vsel %vm416_vm2, %v1221_v44, -inf }
 0x689   :  { %1229 = vmax.xlane.f32.xlu1 %v1228_v46 }
 0x69a   :  { %1323 = vrot.lane.b32.xlu1 %v2664_v55, %s2421_s20 }
 0x69e   :  { %1401 = vrot.lane.b32.xlu1 %v2623_v23, %s2422_s28 }
 0x6a2   :  { %1479 = vrot.lane.b32.xlu1 %v2621_v20, %s2422_s28 }
 0x6a6   :  { %1477 = vrot.lane.b32.xlu1 %v2640_v26, %s2422_s28 }
 0x709   :  { %v1227_v47 = vpop.xlane.xlu0 %1226 }
 0x70a   :  { %v1231_v48 = vsub.f32 %v1143_v39, %v1227_v47  ;;  %v1763_v39 = vld [vmem:[#allocation14 + $0x10] sm:$0xff] }
 0x70c   :  { %v1233_v49 = vmul.f32 1.442695, %v1231_v48 }
 0x70e   :  { %2159 = vpow2.f32 %v1233_v49 }
 0x716   :  { %v1230_v50 = vpop.xlane.xlu1 %1229 }
 0x717   :  { %v1232_v20 = vsub.f32 %v1221_v44, %v1230_v50 }
 0x718   :  { %v2160_v51 = vpop.eup %2159 }
 0x719   :  { %v1237_v52 = vsel %vm416_vm2, %v2160_v51, 0.0  ;;  %v1235_v23 = vmul.f32 1.442695, %v1232_v20 }
 0x71a   :  { %1238 = vadd.xlane.f32.xlu0 %v1237_v52  ;;  %v1324_v53 = vpop.permute.xlu1 %1323 }
 0x71b   :  { %2057 = vmatpush3.msra.mxu1 %v1324_v53  ;;  %2161 = vpow2.f32 %v1235_v23 }
 0x71c   :  { %2066 = vmatprep.subr.mxu1 %v2418_v14 }
 0x71e   :  { %v1402_v61 = vpop.permute.xlu1 %1401 }
 0x722   :  { %v1480_v0 = vpop.permute.xlu1 %1479 }
 0x725   :  { %v2162_v26 = vpop.eup %2161 }
 0x726   :  { %v1240_v54 = vsel %vm416_vm2, %v2162_v26, 0.0  ;;  %v1478_v2 = vpop.permute.xlu1 %1477 }
 0x730   :  { %1247 = vrot.lane.b32.xlu0 %v2666_v56, %s2421_s20 }
 0x74f   :  { %1241 = vadd.xlane.f32.xlu0 %v1240_v54  ;;  %v1909_v54 = vld [vmem:[#allocation16] ss:$0 sm:$0xff] }
 0x765   :  { %1399 = vrot.lane.b32.xlu0 %v2625_v24, %s2422_s28 }
 0x7a7   :  { %v1239_v57 = vpop.xlane.xlu0 %1238 }
 0x7a8   :  { %2163 = vrcp.f32 %v1239_v57 }
 0x7ab   :  { %v1248_v58 = vpop.permute.xlu0 %1247 }
 0x7ac   :  { %2052 = vmatpush3.msra.mxu0 %v1248_v58 }
 0x7ad   :  { %2061 = vmatprep.subr.mxu0 %v2418_v14 }
 0x7b2   :  { %v2164_v59 = vpop.eup %2163 }
 0x7b3   :  { %v1245_v60 = vmul.f32 %v2164_v59, %v2160_v51 }
 0x7b5   :  { %2054 = vmatmul.mubr.msk.f32.vlgmr.msra.gmra.mrb[10].mxu0 %vm416_vm2, %v1245_v60 }
 0x7b6   :  { %2062 = vmatpush3.xpose.msk.msra.mxu0 %vm416_vm2, %v1402_v61  ;;  %2063 = vmatprep.mubr.msk.f32.mxu0 %vm2419_vm1, %v2418_v14 }
 0x7b7   :  { %2071 = vmatprep.subr.mxu0 %v2418_v14 }
 0x7dc   :  { %v1242_v62 = vpop.xlane.xlu0 %1241 }
 0x7dd   :  { %2165 = vrcp.f32 %v1242_v62 }
 0x7e0   :  { %v1400_v24 = vpop.permute.xlu0 %1399 }
 0x7e1   :  { %2064 = vmatmul.mubr.msk.f32.vlgmr.msra.gmra.mrb[12].mxu0 %vm416_vm2, %v1400_v24 }
 0x7e2   :  { %2073 = vmatprep.mubr.msk.f32.mxu0 %vm2419_vm1, %v2418_v14 }
 0x7e7   :  { %v2166_v63 = vpop.eup %2165 }
 0x7e8   :  { %v1246_v1 = vmul.f32 %v2166_v63, %v2162_v26 }
 0x7ea   :  { %2059 = vmatmul.mubr.msk.f32.vlgmr.msra.gmra.mrb[16].mxu1 %vm416_vm2, %v1246_v1 }
 0x7eb   :  { %2067 = vmatpush3.xpose.msk.msra.mxu1 %vm416_vm2, %v1480_v0  ;;  %2068 = vmatprep.mubr.msk.f32.mxu1 %vm2419_vm1, %v2418_v14 }
 0x7ec   :  { %2076 = vmatprep.subr.mxu1 %v2418_v14 }
 0x7ee   :  { %2069 = vmatmul.mubr.msk.f32.vlgmr.msra.gmra.mrb[18].mxu1 %vm416_vm2, %v1478_v2 }
 0x7ef   :  { %2078 = vmatprep.mubr.msk.f32.mxu1 %vm2419_vm1, %v2418_v14 }
 0x888   :  { %v1319_v3 = vpop.f32.mrb[10].mxu0 }
 0x889   :  { %v2055_v4 = vpop.f32.mrb[11].mxu0 }
 0x8b4   :  { %v1473_v5 = vpop.f32.mrb[12].mxu0 }
 0x8b5   :  { %v2065_v6 = vpop.f32.mrb[13].mxu0  ;;  %v1555_v7 = vsel %vm416_vm2, %v1473_v5, -inf }
 0x8b6   :  { %1556 = vmax.xlane.f32.xlu0 %v1555_v7 }
 0x8bd   :  { %v1395_v9 = vpop.f32.mrb[16].mxu1 }
 0x8be   :  { %v2060_v11 = vpop.f32.mrb[17].mxu1 }
 0x8c1   :  { %v1551_v12 = vpop.f32.mrb[18].mxu1 }
 0x8c2   :  { %v2070_v13 = vpop.f32.mrb[19].mxu1  ;;  %v1558_v15 = vsel %vm416_vm2, %v1551_v12, -inf }
 0x8c3   :  { %1559 = vmax.xlane.f32.xlu1 %v1558_v15 }
 0x8d4   :  { %1653 = vrot.lane.b32.xlu1 %v2664_v55, %s2422_s28 }
 0x8d8   :  { %1731 = vrot.lane.b32.xlu1 %v2721_v37, %s2410_s22  ;;  %v1762_v37 = vld [vmem:[#allocation14 + $0x8] sm:$0xff] }
 0x8d9   :  { %v2116_v38 = vpack.c.bf16 %v1762_v37, %v1761_v36 }
 0x8dc   :  { %1733 = vrot.lane.b32.xlu1 %v2724_v42, %s2410_s22 }
 0x8e0   :  { %1741 = vrot.lane.b32.xlu1 %v1395_v9, %s2423_s29 }
 0x943   :  { %v1557_v14 = vpop.xlane.xlu0 %1556 }
 0x944   :  { %v1561_v16 = vsub.f32 %v1473_v5, %v1557_v14 }
 0x946   :  { %v1563_v17 = vmul.f32 1.442695, %v1561_v16 }
 0x948   :  { %2167 = vpow2.f32 %v1563_v17 }
 0x950   :  { %v1560_v18 = vpop.xlane.xlu1 %1559 }
 0x951   :  { %v1562_v19 = vsub.f32 %v1551_v12, %v1560_v18 }
 0x952   :  { %v2168_v21 = vpop.eup %2167 }
 0x953   :  { %v1565_v22 = vmul.f32 1.442695, %v1562_v19  ;;  %v1567_v25 = vsel %vm416_vm2, %v2168_v21, 0.0 }
 0x954   :  { %1568 = vadd.xlane.f32.xlu0 %v1567_v25  ;;  %v1654_v55 = vpop.permute.xlu1 %1653 }
 0x955   :  { %2169 = vpow2.f32 %v1565_v22  ;;  %2077 = vmatpush3.msra.mxu1 %v1654_v55 }
 0x958   :  { %v1732_v45 = vpop.permute.xlu1 %1731 }
 0x959   :  { %v1753_v48 = vsel %vm416_vm2, %v2685_v8, %v1732_v45 }
 0x95c   :  { %v1734_v47 = vpop.permute.xlu1 %1733 }
 0x95d   :  { %v1754_v53 = vsel %vm416_vm2, %v2687_v10, %v1734_v47 }
 0x95f   :  { %v2170_v27 = vpop.eup %2169 }
 0x960   :  { %v1570_v28 = vsel %vm416_vm2, %v2170_v27, 0.0  ;;  %v1742_v52 = vpop.permute.xlu1 %1741 }
 0x961   :  { %1571 = vadd.xlane.f32.xlu0 %v1570_v28  ;;  %v1757_v20 = vsel %vm1755_vm4, %v1754_v53, %v1742_v52 }
 0x977   :  { %1577 = vrot.lane.b32.xlu0 %v2666_v56, %s2422_s28  ;;  %v1764_v56 = vld [vmem:[#allocation14 + $0x18] sm:$0xff] }
 0x978   :  { %v2120_v40 = vpack.c.bf16 %v1764_v56, %v1763_v39 }
 0x97b   :  { %1739 = vrot.lane.b32.xlu0 %v1319_v3, %s2423_s29 }
 0x9e1   :  { %v1569_v29 = vpop.xlane.xlu0 %1568 }
 0x9e2   :  { %2171 = vrcp.f32 %v1569_v29 }
 0x9ec   :  { %v2172_v31 = vpop.eup %2171 }
 0x9ed   :  { %v1575_v32 = vmul.f32 %v2172_v31, %v2168_v21 }
 0x9ee   :  { %v1572_v30 = vpop.xlane.xlu0 %1571 }
 0x9ef   :  { %2173 = vrcp.f32 %v1572_v30 }
 0x9f2   :  { %v1578_v33 = vpop.permute.xlu0 %1577 }
 0x9f3   :  { %2072 = vmatpush3.msra.mxu0 %v1578_v33 }
 0x9f4   :  { %2074 = vmatmul.mubr.msk.f32.vlgmr.msra.gmra.mrb[14].mxu0 %vm416_vm2, %v1575_v32  ;;  %2117 = vmatprep.subr.bf16.mxu0 %v2116_v38 }
 0x9f5   :  { %2119 = vmatpush3.bf16.msra.mxu0 %v2116_v38 }
 0x9f6   :  { %2121 = vmatprep.subr.bf16.mxu0 %v2120_v40  ;;  %v1740_v46 = vpop.permute.xlu0 %1739 }
 0x9f7   :  { %v1756_v49 = vsel %vm1755_vm4, %v1753_v48, %v1740_v46 }
 0x9f9   :  { %v2174_v34 = vpop.eup %2173  ;;  %2123 = vmatpush3.bf16.msra.mxu0 %v2120_v40 }
 0x9fa   :  { %v1576_v35 = vmul.f32 %v2174_v34, %v2170_v27 }
 0x9fc   :  { %2079 = vmatmul.mubr.msk.f32.vlgmr.msra.gmra.mrb[20].mxu1 %vm416_vm2, %v1576_v35 }
 0xac7   :  { %v1649_v41 = vpop.f32.mrb[14].mxu0 }
 0xac8   :  { %1747 = vrot.lane.b32.xlu0 %v1649_v41, %s2424_s30  ;;  %v2075_v42 = vpop.f32.mrb[15].mxu0 }
 0xacf   :  { %v1725_v43 = vpop.f32.mrb[20].mxu1 }
 0xad0   :  { %1749 = vrot.lane.b32.xlu1 %v1725_v43, %s2424_s30  ;;  %v2080_v44 = vpop.f32.mrb[21].mxu1 }
 0xb3a   :  { %v1748_v50 = vpop.permute.xlu0 %1747 }
 0xb3b   :  { %v1759_v51 = vsel %vm1758_vm3, %v1756_v49, %v1748_v50 }
 0xb3c   :  { %2089 = vmatprep.mubr.msk.f32.mxu0 %vm160_vm0, %v1759_v51 }
 0xb42   :  { %v1750_v23 = vpop.permute.xlu1 %1749 }
 0xb43   :  { %v1760_v26 = vsel %vm1758_vm3, %v1757_v20, %v1750_v23 }
 0xb44   :  { %2090 = vmatmul.mubr.msk.f32.vlgmr.msra.gmra.mrb[16].mxu0 %vm160_vm0, %v1760_v26 }
 0xc17   :  { %v2091_v57 = vpop.f32.mrb[16].mxu0 }
 0xc18   :  { %v1850_v8 = vadd.f32 %v2091_v57, %v1909_v54  ;;  %v1844_v58 = vpop.f32.mrb[17].mxu0 }
 0xc19   :  { %v1845_v59 = vadd.f32 %v1909_v54, %v1844_v58 }
 0xc1a   :  { %1854 = vst.msk [vmem:[#allocation17 + $0x8] sm:$0xff] %vm160_vm0, %v1850_v8 }
 0xc1b   :  { %1853 = vst.msk [vmem:[#allocation17] sm:$0xff] %vm160_vm0, %v1845_v59 }
 0xc1c   :  { %2384 = shalt.err (!%p2381_p6)
}
 0xc1d   :  { %s2385_s5 = scalar_lea.hbm %s2805_s9, 256 }
 0xc1e   :  { %p2386_p7 = scmp.ne.s32.totalorder %s2805_s9, %s2385_s5  ;;  %p2389_p8 = scmp.lt.u32.totalorder %s2385_s5, %s2805_s9 }
 0xc20   :  { %p2391_p9 = pnand %p2389_p8, %p2386_p7 }
 0xc22   :  { %2394 = shalt.err (!%p2391_p9)
}
 0xc23   :  { %1866 = dma.vmem_to_hbm [thread:$0]  %s1861_s13, 256, %s2805_s9, [#allocation4], %s2409_s21, %s2409_s21, %s2410_s22  }
 0xc24   :  { %2405 = dma.done.wait [#allocation4], 256  }
 0xc25   :  { %2406 = vsyncadd [#allocation4], 4294967040 }
 0xc26   :  { %1870 = vsyncpa [#allocation3], 1 }
 0xc27   :  { %1871 = vsyncpa [#allocation6], 1 }
 0xc28   :  { %1872 = vsyncpa [#allocation9], 1 }
 0xc29   :  { %1873 = vsyncpa [#allocation12], 1 }
 0xc2a   :  { %1874 = vsyncpa [#allocation15], 1 }
 0xc2b   :  { %1875 = vsyncpa [#allocation4], 1 }

</bundles_post_ra>
